<compile_context>
chip_gen: v7x
topology: tpu7x:2x2x1
jax: 0.10.0
libtpu: 0.0.40
codegen_flags: <defaults>
</compile_context>

<pallas_src>
import math

import jax
import jax.numpy as jnp
from jax import lax
from jax.experimental import pallas as pl
from jax.experimental.pallas import tpu as pltpu

EPS = 1e-5  # nn.InstanceNorm2d default (affine=False, biased variance)


def _pick_cs(C, W):
    """Smallest padded channel count Cs >= C making the lane dim W*Cs a multiple of 128
    (falls back to no padding if that would blow channels up absurdly for exotic W)."""
    step = 128 // math.gcd(W, 128)
    cs = ((C + step - 1) // step) * step
    if cs > max(4 * C, 32):
        cs = C
    return cs


def _pick_g(N, H):
    """Samples packed per grid step: largest divisor of N with G*H <= 256 sublanes."""
    cap = max(1, 256 // H)
    best = 1
    for g in range(1, min(N, cap) + 1):
        if N % g == 0:
            best = g
    return best


def resnet_block(x_nchw, w1, b1, w2, b2):
    """Forward of the PyTorch ResNetBlock.
    x: (N, C, H, W) f32; w*: (C, C, 3, 3) OIHW; b*: (C,) (unused: exact no-op before the
    affine-free InstanceNorm).  Returns (N, C, H, W) f32."""
    del b1, b2  # conv biases cancel under InstanceNorm(affine=False) -> dropped (review item)
    N, C, H, W = x_nchw.shape
    f32 = jnp.float32

    Cs = _pick_cs(C, W)
    L = W * Cs                      # lane dim (128 for the test shape)
    G = _pick_g(N, H)               # samples per grid step
    NB = N // G                     # grid size
    GH = G * H                      # sublane dim per step

    # ---- pack activations: NCHW -> (NB, G*H, W*Cs); lane index = w*Cs + channel ----
    x = jnp.transpose(x_nchw, (0, 2, 3, 1)).astype(f32)          # (N, H, W, C)
    x = jnp.pad(x, ((0, 0), (0, 0), (0, 0), (0, Cs - C)))        # (N, H, W, Cs)
    x = x.reshape(NB, GH, L)

    # ---- fold the 3x3 stencil into constant matrices (built once, on the host) ----
    def make_B(w, d):
        # B_kh[w'*Cs+ci, w*Cs+co] = sum_kw [w' == w + d*(kw-1)] * w[co, ci, kh, kw]
        wp = jnp.pad(w.astype(f32), ((0, Cs - C), (0, Cs - C), (0, 0), (0, 0)))
        rows = []
        for kh in range(3):
            Bk = jnp.zeros((L, L), f32)
            for kw in range(3):
                dw = d * (kw - 1)
                Sw = jnp.eye(W, k=-dw, dtype=f32)                # [w', w] = 1 iff w' == w + dw
                Bk = Bk + jnp.kron(Sw, wp[:, :, kh, kw].T)       # (ci, co) block per (w', w)
            rows.append(Bk)
        return jnp.stack(rows)                                   # (3, L, L)

    def make_A(d):
        # A_kh[r, r'] = 1 iff r' = r + d*(kh-1), within the same packed sample (zero-pads h)
        rows = [jnp.kron(jnp.eye(G, dtype=f32), jnp.eye(H, k=d * (kh - 1), dtype=f32))
                for kh in range(3)]
        return jnp.stack(rows)                                   # (3, GH, GH)

    B1, B2 = make_B(w1, 2), make_B(w2, 1)                        # conv1: dilation 2, conv2: 1
    A1, A2 = make_A(2), make_A(1)
    P = jnp.kron(jnp.eye(G, dtype=f32), jnp.full((H, H), 1.0 / H, f32))   # row (h) mean+bcast
    R = jnp.kron(jnp.full((W, W), 1.0 / W, f32), jnp.eye(Cs, dtype=f32))  # lane (w) mean+bcast

    def kernel(x_ref, b1_ref, b2_ref, a1_ref, a2_ref, p_ref, r_ref, o_ref):
        xb = x_ref[0]                                            # (GH, L) f32 residual

        def conv(src, b_ref, a_ref):
            # out = sum_kh A_kh @ (src @ B_kh); kh == 1 has A == identity -> skipped.
            acc = jnp.dot(src, b_ref[1], preferred_element_type=f32)
            for kh in (0, 2):
                t = jnp.dot(src, b_ref[kh], preferred_element_type=f32)
                acc = acc + jnp.dot(a_ref[kh], t, preferred_element_type=f32)
            return acc

        def inorm(h):
            # two-pass, biased variance (matches InstanceNorm2d; avoids E[x^2]-mean^2 cancellation)
            mean = jnp.dot(jnp.dot(p_ref[...], h, preferred_element_type=f32),
                           r_ref[...], preferred_element_type=f32)
            c = h - mean
            var = jnp.dot(jnp.dot(p_ref[...], c * c, preferred_element_type=f32),
                          r_ref[...], preferred_element_type=f32)
            return c * lax.rsqrt(var + EPS)

        h = conv(xb, b1_ref, a1_ref)                             # conv1: k3, pad 2, dilation 2
        h = jnp.maximum(inorm(h), 0.0)
        h = conv(h, b2_ref, a2_ref)                              # conv2: k3, pad 1
        h = inorm(h)
        o_ref[0] = jnp.maximum(h + xb, 0.0)                      # residual + final ReLU

    out = pl.pallas_call(
        kernel,
        out_shape=jax.ShapeDtypeStruct((NB, GH, L), f32),
        grid=(NB,),
        in_specs=[
            pl.BlockSpec((1, GH, L), lambda i: (i, 0, 0)),       # activations (per sample block)
            pl.BlockSpec((3, L, L), lambda i: (0, 0, 0)),        # B1 (constant, VMEM-resident)
            pl.BlockSpec((3, L, L), lambda i: (0, 0, 0)),        # B2
            pl.BlockSpec((3, GH, GH), lambda i: (0, 0, 0)),      # A1
            pl.BlockSpec((3, GH, GH), lambda i: (0, 0, 0)),      # A2
            pl.BlockSpec((GH, GH), lambda i: (0, 0)),            # P (instance-norm row reduce)
            pl.BlockSpec((L, L), lambda i: (0, 0)),              # R (instance-norm lane reduce)
        ],
        out_specs=pl.BlockSpec((1, GH, L), lambda i: (i, 0, 0)),
        compiler_params=pltpu.CompilerParams(dimension_semantics=("parallel",)),
    )(x, B1, B2, A1, A2, P, R)

    out = out.reshape(N, H, W, Cs)[..., :C]
    return jnp.transpose(out, (0, 3, 1, 2))


def _reference(x, w1, b1, w2, b2):
    """Pure-JAX f32 reference of the PyTorch ResNetBlock forward (NCHW, biases included)."""
    dn = ("NCHW", "OIHW", "NCHW")

    def inorm(h):
        mean = jnp.mean(h, axis=(2, 3), keepdims=True)
        var = jnp.mean(jnp.square(h - mean), axis=(2, 3), keepdims=True)
        return (h - mean) * lax.rsqrt(var + EPS)

    h = lax.conv_general_dilated(x, w1, (1, 1), ((2, 2), (2, 2)),
                                 rhs_dilation=(2, 2), dimension_numbers=dn)
    h = h + b1[None, :, None, None]
    h = jnp.maximum(inorm(h), 0.0)
    h = lax.conv_general_dilated(h, w2, (1, 1), ((1, 1), (1, 1)), dimension_numbers=dn)
    h = h + b2[None, :, None, None]
    h = inorm(h)
    return jnp.maximum(h + x, 0.0)


if __name__ == "__main__":
    N, C, H, W = 2, 4, 16, 16
    key = jax.random.PRNGKey(0)
    kx, kw1, kb1, kw2, kb2 = jax.random.split(key, 5)

    x = jax.random.normal(kx, (N, C, H, W), dtype=jnp.float32)
    w1 = jax.random.normal(kw1, (C, C, 3, 3), dtype=jnp.float32) * 0.1
    b1 = jax.random.normal(kb1, (C,), dtype=jnp.float32) * 0.1
    w2 = jax.random.normal(kw2, (C, C, 3, 3), dtype=jnp.float32) * 0.1
    b2 = jax.random.normal(kb2, (C,), dtype=jnp.float32) * 0.1

    out = jax.block_until_ready(resnet_block(x, w1, b1, w2, b2))

    ref = _reference(x, w1, b1, w2, b2)
    assert out.shape == (N, C, H, W)
    max_err = float(jnp.max(jnp.abs(out - ref)))
    # Tolerance left relaxed intentionally: backend matmul precision may be bf16-based.
    assert jnp.allclose(out, ref, atol=3e-2, rtol=3e-2), \
        f"mismatch vs reference, max abs err {max_err}"

    print("KERNEL_OK")
</pallas_src>

<mosaic_0001>
module attributes {stable_mosaic.version = 11 : i64} {
  func.func @kernel(%arg0: i32, %arg1: memref<1x32x128xf32, #tpu.memory_space<vmem>>, %arg2: memref<3x128x128xf32, #tpu.memory_space<vmem>>, %arg3: memref<3x128x128xf32, #tpu.memory_space<vmem>>, %arg4: memref<3x32x32xf32, #tpu.memory_space<vmem>>, %arg5: memref<3x32x32xf32, #tpu.memory_space<vmem>>, %arg6: memref<32x32xf32, #tpu.memory_space<vmem>>, %arg7: memref<128x128xf32, #tpu.memory_space<vmem>>, %arg8: memref<1x32x128xf32, #tpu.memory_space<vmem>>) attributes {dimension_semantics = [#tpu.dimension_semantics<parallel>], iteration_bounds = array<i64: 1>, scalar_prefetch = 0 : i64, scratch_operands = 0 : i64, tpu.core_type = #tpu.core_type<tc>, window_params = [{transform_indices = @transform_0, window_bounds = array<i64: 1, 32, 128>}, {pipeline_mode = #tpu.pipeline_mode<synchronous>, transform_indices = @transform_1, window_bounds = array<i64: 3, 128, 128>}, {pipeline_mode = #tpu.pipeline_mode<synchronous>, transform_indices = @transform_2, window_bounds = array<i64: 3, 128, 128>}, {pipeline_mode = #tpu.pipeline_mode<synchronous>, transform_indices = @transform_3, window_bounds = array<i64: 3, 32, 32>}, {pipeline_mode = #tpu.pipeline_mode<synchronous>, transform_indices = @transform_4, window_bounds = array<i64: 3, 32, 32>}, {pipeline_mode = #tpu.pipeline_mode<synchronous>, transform_indices = @transform_5, window_bounds = array<i64: 32, 32>}, {pipeline_mode = #tpu.pipeline_mode<synchronous>, transform_indices = @transform_6, window_bounds = array<i64: 128, 128>}, {transform_indices = @transform_7, window_bounds = array<i64: 1, 32, 128>}]} {
    %c0 = arith.constant 0 : index
    %c0_0 = arith.constant 0 : index
    %c0_1 = arith.constant 0 : index
    %0 = vector.load %arg1[%c0, %c0_0, %c0_1] : memref<1x32x128xf32, #tpu.memory_space<vmem>>, vector<1x32x128xf32>
    %1 = vector.shape_cast %0 : vector<1x32x128xf32> to vector<32x128xf32>
    %c1 = arith.constant 1 : index
    %c0_2 = arith.constant 0 : index
    %c0_3 = arith.constant 0 : index
    %2 = vector.load %arg2[%c1, %c0_2, %c0_3] : memref<3x128x128xf32, #tpu.memory_space<vmem>>, vector<1x128x128xf32>
    %3 = vector.shape_cast %2 : vector<1x128x128xf32> to vector<128x128xf32>
    %cst = arith.constant dense<0.000000e+00> : vector<32x128xf32>
    %4 = tpu.matmul %1, %3, %cst {dimension_numbers = #tpu.dot_dimension_numbers<[1], [0], [0], [1], [0, 0, 1, 1], [], []>} : vector<32x128xf32>, vector<128x128xf32>, vector<32x128xf32> -> vector<32x128xf32>
    %c0_4 = arith.constant 0 : index
    %c0_5 = arith.constant 0 : index
    %c0_6 = arith.constant 0 : index
    %5 = vector.load %arg2[%c0_4, %c0_5, %c0_6] : memref<3x128x128xf32, #tpu.memory_space<vmem>>, vector<1x128x128xf32>
    %6 = vector.shape_cast %5 : vector<1x128x128xf32> to vector<128x128xf32>
    %cst_7 = arith.constant dense<0.000000e+00> : vector<32x128xf32>
    %7 = tpu.matmul %1, %6, %cst_7 {dimension_numbers = #tpu.dot_dimension_numbers<[1], [0], [0], [1], [0, 0, 1, 1], [], []>} : vector<32x128xf32>, vector<128x128xf32>, vector<32x128xf32> -> vector<32x128xf32>
    %c0_8 = arith.constant 0 : index
    %c0_9 = arith.constant 0 : index
    %c0_10 = arith.constant 0 : index
    %8 = vector.load %arg4[%c0_8, %c0_9, %c0_10] : memref<3x32x32xf32, #tpu.memory_space<vmem>>, vector<1x32x32xf32>
    %9 = vector.shape_cast %8 : vector<1x32x32xf32> to vector<32x32xf32>
    %cst_11 = arith.constant dense<0.000000e+00> : vector<32x128xf32>
    %10 = tpu.matmul %9, %7, %cst_11 {dimension_numbers = #tpu.dot_dimension_numbers<[1], [0], [0], [1], [0, 0, 1, 1], [], []>} : vector<32x32xf32>, vector<32x128xf32>, vector<32x128xf32> -> vector<32x128xf32>
    %11 = arith.addf %4, %10 : vector<32x128xf32>
    %c2 = arith.constant 2 : index
    %c0_12 = arith.constant 0 : index
    %c0_13 = arith.constant 0 : index
    %12 = vector.load %arg2[%c2, %c0_12, %c0_13] : memref<3x128x128xf32, #tpu.memory_space<vmem>>, vector<1x128x128xf32>
    %13 = vector.shape_cast %12 : vector<1x128x128xf32> to vector<128x128xf32>
    %cst_14 = arith.constant dense<0.000000e+00> : vector<32x128xf32>
    %14 = tpu.matmul %1, %13, %cst_14 {dimension_numbers = #tpu.dot_dimension_numbers<[1], [0], [0], [1], [0, 0, 1, 1], [], []>} : vector<32x128xf32>, vector<128x128xf32>, vector<32x128xf32> -> vector<32x128xf32>
    %c2_15 = arith.constant 2 : index
    %c0_16 = arith.constant 0 : index
    %c0_17 = arith.constant 0 : index
    %15 = vector.load %arg4[%c2_15, %c0_16, %c0_17] : memref<3x32x32xf32, #tpu.memory_space<vmem>>, vector<1x32x32xf32>
    %16 = vector.shape_cast %15 : vector<1x32x32xf32> to vector<32x32xf32>
    %cst_18 = arith.constant dense<0.000000e+00> : vector<32x128xf32>
    %17 = tpu.matmul %16, %14, %cst_18 {dimension_numbers = #tpu.dot_dimension_numbers<[1], [0], [0], [1], [0, 0, 1, 1], [], []>} : vector<32x32xf32>, vector<32x128xf32>, vector<32x128xf32> -> vector<32x128xf32>
    %18 = arith.addf %11, %17 : vector<32x128xf32>
    %c0_19 = arith.constant 0 : index
    %c0_20 = arith.constant 0 : index
    %19 = vector.load %arg6[%c0_19, %c0_20] : memref<32x32xf32, #tpu.memory_space<vmem>>, vector<32x32xf32>
    %cst_21 = arith.constant dense<0.000000e+00> : vector<32x128xf32>
    %20 = tpu.matmul %19, %18, %cst_21 {dimension_numbers = #tpu.dot_dimension_numbers<[1], [0], [0], [1], [0, 0, 1, 1], [], []>} : vector<32x32xf32>, vector<32x128xf32>, vector<32x128xf32> -> vector<32x128xf32>
    %c0_22 = arith.constant 0 : index
    %c0_23 = arith.constant 0 : index
    %21 = vector.load %arg7[%c0_22, %c0_23] : memref<128x128xf32, #tpu.memory_space<vmem>>, vector<128x128xf32>
    %cst_24 = arith.constant dense<0.000000e+00> : vector<32x128xf32>
    %22 = tpu.matmul %20, %21, %cst_24 {dimension_numbers = #tpu.dot_dimension_numbers<[1], [0], [0], [1], [0, 0, 1, 1], [], []>} : vector<32x128xf32>, vector<128x128xf32>, vector<32x128xf32> -> vector<32x128xf32>
    %23 = arith.subf %18, %22 : vector<32x128xf32>
    %c0_25 = arith.constant 0 : index
    %c0_26 = arith.constant 0 : index
    %24 = vector.load %arg6[%c0_25, %c0_26] : memref<32x32xf32, #tpu.memory_space<vmem>>, vector<32x32xf32>
    %25 = arith.mulf %23, %23 : vector<32x128xf32>
    %cst_27 = arith.constant dense<0.000000e+00> : vector<32x128xf32>
    %26 = tpu.matmul %24, %25, %cst_27 {dimension_numbers = #tpu.dot_dimension_numbers<[1], [0], [0], [1], [0, 0, 1, 1], [], []>} : vector<32x32xf32>, vector<32x128xf32>, vector<32x128xf32> -> vector<32x128xf32>
    %c0_28 = arith.constant 0 : index
    %c0_29 = arith.constant 0 : index
    %27 = vector.load %arg7[%c0_28, %c0_29] : memref<128x128xf32, #tpu.memory_space<vmem>>, vector<128x128xf32>
    %cst_30 = arith.constant dense<0.000000e+00> : vector<32x128xf32>
    %28 = tpu.matmul %26, %27, %cst_30 {dimension_numbers = #tpu.dot_dimension_numbers<[1], [0], [0], [1], [0, 0, 1, 1], [], []>} : vector<32x128xf32>, vector<128x128xf32>, vector<32x128xf32> -> vector<32x128xf32>
    %cst_31 = arith.constant 9.99999974E-6 : f32
    %29 = vector.broadcast %cst_31 : f32 to vector<32x128xf32>
    %30 = arith.addf %28, %29 : vector<32x128xf32>
    %31 = math.rsqrt %30 : vector<32x128xf32>
    %32 = arith.mulf %23, %31 : vector<32x128xf32>
    %cst_32 = arith.constant 0.000000e+00 : f32
    %33 = vector.broadcast %cst_32 : f32 to vector<32x128xf32>
    %34 = arith.maximumf %32, %33 : vector<32x128xf32>
    %c1_33 = arith.constant 1 : index
    %c0_34 = arith.constant 0 : index
    %c0_35 = arith.constant 0 : index
    %35 = vector.load %arg3[%c1_33, %c0_34, %c0_35] : memref<3x128x128xf32, #tpu.memory_space<vmem>>, vector<1x128x128xf32>
    %36 = vector.shape_cast %35 : vector<1x128x128xf32> to vector<128x128xf32>
    %cst_36 = arith.constant dense<0.000000e+00> : vector<32x128xf32>
    %37 = tpu.matmul %34, %36, %cst_36 {dimension_numbers = #tpu.dot_dimension_numbers<[1], [0], [0], [1], [0, 0, 1, 1], [], []>} : vector<32x128xf32>, vector<128x128xf32>, vector<32x128xf32> -> vector<32x128xf32>
    %c0_37 = arith.constant 0 : index
    %c0_38 = arith.constant 0 : index
    %c0_39 = arith.constant 0 : index
    %38 = vector.load %arg3[%c0_37, %c0_38, %c0_39] : memref<3x128x128xf32, #tpu.memory_space<vmem>>, vector<1x128x128xf32>
    %39 = vector.shape_cast %38 : vector<1x128x128xf32> to vector<128x128xf32>
    %cst_40 = arith.constant dense<0.000000e+00> : vector<32x128xf32>
    %40 = tpu.matmul %34, %39, %cst_40 {dimension_numbers = #tpu.dot_dimension_numbers<[1], [0], [0], [1], [0, 0, 1, 1], [], []>} : vector<32x128xf32>, vector<128x128xf32>, vector<32x128xf32> -> vector<32x128xf32>
    %c0_41 = arith.constant 0 : index
    %c0_42 = arith.constant 0 : index
    %c0_43 = arith.constant 0 : index
    %41 = vector.load %arg5[%c0_41, %c0_42, %c0_43] : memref<3x32x32xf32, #tpu.memory_space<vmem>>, vector<1x32x32xf32>
    %42 = vector.shape_cast %41 : vector<1x32x32xf32> to vector<32x32xf32>
    %cst_44 = arith.constant dense<0.000000e+00> : vector<32x128xf32>
    %43 = tpu.matmul %42, %40, %cst_44 {dimension_numbers = #tpu.dot_dimension_numbers<[1], [0], [0], [1], [0, 0, 1, 1], [], []>} : vector<32x32xf32>, vector<32x128xf32>, vector<32x128xf32> -> vector<32x128xf32>
    %44 = arith.addf %37, %43 : vector<32x128xf32>
    %c2_45 = arith.constant 2 : index
    %c0_46 = arith.constant 0 : index
    %c0_47 = arith.constant 0 : index
    %45 = vector.load %arg3[%c2_45, %c0_46, %c0_47] : memref<3x128x128xf32, #tpu.memory_space<vmem>>, vector<1x128x128xf32>
    %46 = vector.shape_cast %45 : vector<1x128x128xf32> to vector<128x128xf32>
    %cst_48 = arith.constant dense<0.000000e+00> : vector<32x128xf32>
    %47 = tpu.matmul %34, %46, %cst_48 {dimension_numbers = #tpu.dot_dimension_numbers<[1], [0], [0], [1], [0, 0, 1, 1], [], []>} : vector<32x128xf32>, vector<128x128xf32>, vector<32x128xf32> -> vector<32x128xf32>
    %c2_49 = arith.constant 2 : index
    %c0_50 = arith.constant 0 : index
    %c0_51 = arith.constant 0 : index
    %48 = vector.load %arg5[%c2_49, %c0_50, %c0_51] : memref<3x32x32xf32, #tpu.memory_space<vmem>>, vector<1x32x32xf32>
    %49 = vector.shape_cast %48 : vector<1x32x32xf32> to vector<32x32xf32>
    %cst_52 = arith.constant dense<0.000000e+00> : vector<32x128xf32>
    %50 = tpu.matmul %49, %47, %cst_52 {dimension_numbers = #tpu.dot_dimension_numbers<[1], [0], [0], [1], [0, 0, 1, 1], [], []>} : vector<32x32xf32>, vector<32x128xf32>, vector<32x128xf32> -> vector<32x128xf32>
    %51 = arith.addf %44, %50 : vector<32x128xf32>
    %c0_53 = arith.constant 0 : index
    %c0_54 = arith.constant 0 : index
    %52 = vector.load %arg6[%c0_53, %c0_54] : memref<32x32xf32, #tpu.memory_space<vmem>>, vector<32x32xf32>
    %cst_55 = arith.constant dense<0.000000e+00> : vector<32x128xf32>
    %53 = tpu.matmul %52, %51, %cst_55 {dimension_numbers = #tpu.dot_dimension_numbers<[1], [0], [0], [1], [0, 0, 1, 1], [], []>} : vector<32x32xf32>, vector<32x128xf32>, vector<32x128xf32> -> vector<32x128xf32>
    %c0_56 = arith.constant 0 : index
    %c0_57 = arith.constant 0 : index
    %54 = vector.load %arg7[%c0_56, %c0_57] : memref<128x128xf32, #tpu.memory_space<vmem>>, vector<128x128xf32>
    %cst_58 = arith.constant dense<0.000000e+00> : vector<32x128xf32>
    %55 = tpu.matmul %53, %54, %cst_58 {dimension_numbers = #tpu.dot_dimension_numbers<[1], [0], [0], [1], [0, 0, 1, 1], [], []>} : vector<32x128xf32>, vector<128x128xf32>, vector<32x128xf32> -> vector<32x128xf32>
    %56 = arith.subf %51, %55 : vector<32x128xf32>
    %c0_59 = arith.constant 0 : index
    %c0_60 = arith.constant 0 : index
    %57 = vector.load %arg6[%c0_59, %c0_60] : memref<32x32xf32, #tpu.memory_space<vmem>>, vector<32x32xf32>
    %58 = arith.mulf %56, %56 : vector<32x128xf32>
    %cst_61 = arith.constant dense<0.000000e+00> : vector<32x128xf32>
    %59 = tpu.matmul %57, %58, %cst_61 {dimension_numbers = #tpu.dot_dimension_numbers<[1], [0], [0], [1], [0, 0, 1, 1], [], []>} : vector<32x32xf32>, vector<32x128xf32>, vector<32x128xf32> -> vector<32x128xf32>
    %c0_62 = arith.constant 0 : index
    %c0_63 = arith.constant 0 : index
    %60 = vector.load %arg7[%c0_62, %c0_63] : memref<128x128xf32, #tpu.memory_space<vmem>>, vector<128x128xf32>
    %cst_64 = arith.constant dense<0.000000e+00> : vector<32x128xf32>
    %61 = tpu.matmul %59, %60, %cst_64 {dimension_numbers = #tpu.dot_dimension_numbers<[1], [0], [0], [1], [0, 0, 1, 1], [], []>} : vector<32x128xf32>, vector<128x128xf32>, vector<32x128xf32> -> vector<32x128xf32>
    %cst_65 = arith.constant 9.99999974E-6 : f32
    %62 = vector.broadcast %cst_65 : f32 to vector<32x128xf32>
    %63 = arith.addf %61, %62 : vector<32x128xf32>
    %64 = math.rsqrt %63 : vector<32x128xf32>
    %65 = arith.mulf %56, %64 : vector<32x128xf32>
    %66 = arith.addf %65, %1 : vector<32x128xf32>
    %cst_66 = arith.constant 0.000000e+00 : f32
    %67 = vector.broadcast %cst_66 : f32 to vector<32x128xf32>
    %68 = arith.maximumf %66, %67 : vector<32x128xf32>
    %c0_67 = arith.constant 0 : index
    %c0_68 = arith.constant 0 : index
    %c0_69 = arith.constant 0 : index
    %69 = vector.load %arg8[%c0_67, %c0_68, %c0_69] : memref<1x32x128xf32, #tpu.memory_space<vmem>>, vector<1x32x128xf32>
    %70 = vector.shape_cast %69 : vector<1x32x128xf32> to vector<32x128xf32>
    %71 = vector.shape_cast %68 : vector<32x128xf32> to vector<1x32x128xf32>
    tpu.vector_store %arg8[%c0_67, %c0_68, %c0_69], %71 {strides = array<i32>} : memref<1x32x128xf32, #tpu.memory_space<vmem>>, vector<1x32x128xf32>,
    return
  }
  func.func @transform_0(%arg0: i32) -> (i32, i32, i32) {
    %c0_i32 = arith.constant 0 : i32
    %c0_i32_0 = arith.constant 0 : i32
    %c0_i32_1 = arith.constant 0 : i32
    return %arg0, %c0_i32, %c0_i32_0 : i32, i32, i32
  }
  func.func @transform_1(%arg0: i32) -> (i32, i32, i32) {
    %c0_i32 = arith.constant 0 : i32
    %c0_i32_0 = arith.constant 0 : i32
    %c0_i32_1 = arith.constant 0 : i32
    %c0_i32_2 = arith.constant 0 : i32
    return %c0_i32, %c0_i32_0, %c0_i32_1 : i32, i32, i32
  }
  func.func @transform_2(%arg0: i32) -> (i32, i32, i32) {
    %c0_i32 = arith.constant 0 : i32
    %c0_i32_0 = arith.constant 0 : i32
    %c0_i32_1 = arith.constant 0 : i32
    %c0_i32_2 = arith.constant 0 : i32
    return %c0_i32, %c0_i32_0, %c0_i32_1 : i32, i32, i32
  }
  func.func @transform_3(%arg0: i32) -> (i32, i32, i32) {
    %c0_i32 = arith.constant 0 : i32
    %c0_i32_0 = arith.constant 0 : i32
    %c0_i32_1 = arith.constant 0 : i32
    %c0_i32_2 = arith.constant 0 : i32
    return %c0_i32, %c0_i32_0, %c0_i32_1 : i32, i32, i32
  }
  func.func @transform_4(%arg0: i32) -> (i32, i32, i32) {
    %c0_i32 = arith.constant 0 : i32
    %c0_i32_0 = arith.constant 0 : i32
    %c0_i32_1 = arith.constant 0 : i32
    %c0_i32_2 = arith.constant 0 : i32
    return %c0_i32, %c0_i32_0, %c0_i32_1 : i32, i32, i32
  }
  func.func @transform_5(%arg0: i32) -> (i32, i32) {
    %c0_i32 = arith.constant 0 : i32
    %c0_i32_0 = arith.constant 0 : i32
    %c0_i32_1 = arith.constant 0 : i32
    return %c0_i32, %c0_i32_0 : i32, i32
  }
  func.func @transform_6(%arg0: i32) -> (i32, i32) {
    %c0_i32 = arith.constant 0 : i32
    %c0_i32_0 = arith.constant 0 : i32
    %c0_i32_1 = arith.constant 0 : i32
    return %c0_i32, %c0_i32_0 : i32, i32
  }
  func.func @transform_7(%arg0: i32) -> (i32, i32, i32) {
    %c0_i32 = arith.constant 0 : i32
    %c0_i32_0 = arith.constant 0 : i32
    %c0_i32_1 = arith.constant 0 : i32
    return %arg0, %c0_i32, %c0_i32_0 : i32, i32, i32
  }
}

</mosaic_0001>

<bundles_post_ra>
// kernel: tpu_custom_call.1
= control target key start
LH: loop header
LB: loop body
LE: loop exit
PB: predicated region body
PF: predicated region fallthrough
CT: control target
= control target key end

     0   :  { %12 = vsyncpa [#allocation3], 0  ;;  %s3722_s0 = inlined_call_operand.hbm [shape: f32[1,32,128], index: 0, kind: input, shape index: {}]   ;;  %s3723_s1 = inlined_call_operand.hbm [shape: f32[3,128,128], index: 1, kind: input, shape index: {}]   ;;  %s3724_s2 = inlined_call_operand.hbm [shape: f32[3,128,128], index: 2, kind: input, shape index: {}]   ;;  %s3725_s3 = inlined_call_operand.hbm [shape: f32[3,32,32], index: 3, kind: input, shape index: {}]   ;;  %s3726_s4 = inlined_call_operand.hbm [shape: f32[3,32,32], index: 4, kind: input, shape index: {}]   ;;  %s3727_s5 = inlined_call_operand.hbm [shape: f32[32,32], index: 5, kind: input, shape index: {}]   ;;  %s3728_s6 = inlined_call_operand.hbm [shape: f32[128,128], index: 6, kind: input, shape index: {}]   ;;  %s3729_s7 = inlined_call_operand.hbm [shape: f32[1,32,128], index: 7, kind: output, shape index: {}]  }
   0x1   :  { %13 = vsyncpa [#allocation6], 0 }
   0x2   :  { %14 = vsyncpa [#allocation9], 0 }
   0x3   :  { %15 = vsyncpa [#allocation12], 0 }
   0x4   :  { %16 = vsyncpa [#allocation4], 0  ;;  %s3335_s24 = smov [#allocation5]   ;;  %s3336_s26 = smov [#allocation8]  }
   0x5   :  { %s34_s25 = sshll.u32 %s3335_s24, 4  ;;  %s58_s27 = sshll.u32 %s3336_s26, 4  ;;  %s35_s25 = int_to_ptr.vmem [resolvable:$true] %s34_s25  ;;  %s3385_s27 = int_to_ptr.vmem [resolvable:$true] %s58_s27 }
   0x6   :  { %s3149_s30 = scalar_lea.hbm %s3723_s1, 6144 }
   0x7   :  { %p3150_p0 = scmp.ne.s32.totalorder %s3723_s1, %s3149_s30  ;;  %p3153_p1 = scmp.lt.u32.totalorder %s3149_s30, %s3723_s1 }
   0x9   :  { %p3155_p2 = pnand %p3153_p1, %p3150_p0 }
   0xb   :  { %3158 = shalt.err (!%p3155_p2)
}
   0xc   :  { %s3159_s12 = scalar_lea.vmem %s35_s25, 6144  ;;  %p3164_p4 = scmp.lt.s32.totalorder %s35_s25, %s35_s25 }
   0xd   :  { %p3160_p3 = scmp.ne.s32.totalorder %s35_s25, %s3159_s12  ;;  %p3165_p5 = scmp.lt.s32.totalorder %s3159_s12, %s3159_s12 }
   0xf   :  { %p3166_p6 = por %p3165_p5, %p3164_p4 }
  0x11   :  { %p3167_p7 = pnand %p3166_p6, %p3160_p3 }
  0x13   :  { %3170 = shalt.err (!%p3167_p7)
}
  0x14   :  { %s3337_s13 = smov 128   ;;  %s3338_s14 = smov 8  }
  0x15   :  { %40 = dma.hbm_to_vmem [thread:$0]  %s3723_s1, 6144, %s35_s25, [#allocation6], %s3337_s13, %s3337_s13, %s3338_s14  }
  0x16   :  { %s3171_s19 = scalar_lea.hbm %s3725_s3, 1536 }
  0x17   :  { %p3172_p8 = scmp.ne.s32.totalorder %s3725_s3, %s3171_s19  ;;  %p3175_p9 = scmp.lt.u32.totalorder %s3171_s19, %s3725_s3 }
  0x19   :  { %p3177_p10 = pnand %p3175_p9, %p3172_p8 }
  0x1b   :  { %3180 = shalt.err (!%p3177_p10)
}
  0x1c   :  { %s3181_s24 = scalar_lea.vmem %s3385_s27, 1536  ;;  %p3186_p12 = scmp.lt.s32.totalorder %s3385_s27, %s3385_s27 }
  0x1d   :  { %p3182_p11 = scmp.ne.s32.totalorder %s3385_s27, %s3181_s24  ;;  %p3187_p13 = scmp.lt.s32.totalorder %s3181_s24, %s3181_s24 }
  0x1f   :  { %p3188_p0 = por %p3187_p13, %p3186_p12 }
  0x21   :  { %p3189_p1 = pnand %p3188_p0, %p3182_p11 }
  0x23   :  { %3192 = shalt.err (!%p3189_p1)
}
  0x24   :  { %64 = dma.hbm_to_vmem [thread:$0]  %s3725_s3, 1536, %s3385_s27, [#allocation9], %s3337_s13, %s3337_s13, %s3338_s14  }
  0x25   :  { %s3339_s26 = smov [#allocation11]   ;;  %s3340_s29 = smov [#allocation2]  }
  0x26   :  { %s82_s28 = sshll.u32 %s3339_s26, 4  ;;  %s22_s30 = sshll.u32 %s3340_s29, 4  ;;  %s83_s28 = int_to_ptr.vmem [resolvable:$true] %s82_s28  ;;  %s3422_s30 = int_to_ptr.vmem [resolvable:$true] %s22_s30 }
  0x27   :  { %s3193_s10 = scalar_lea.hbm %s3727_s5, 512 }
  0x28   :  { %p3194_p2 = scmp.ne.s32.totalorder %s3727_s5, %s3193_s10  ;;  %p3197_p3 = scmp.lt.u32.totalorder %s3193_s10, %s3727_s5 }
  0x2a   :  { %p3199_p4 = pnand %p3197_p3, %p3194_p2 }
  0x2c   :  { %3202 = shalt.err (!%p3199_p4)
}
  0x2d   :  { %s3203_s3 = scalar_lea.vmem %s83_s28, 512  ;;  %p3208_p6 = scmp.lt.s32.totalorder %s83_s28, %s83_s28 }
  0x2e   :  { %p3204_p5 = scmp.ne.s32.totalorder %s83_s28, %s3203_s3  ;;  %p3209_p7 = scmp.lt.s32.totalorder %s3203_s3, %s3203_s3 }
  0x30   :  { %p3210_p8 = por %p3209_p7, %p3208_p6 }
  0x32   :  { %p3211_p9 = pnand %p3210_p8, %p3204_p5 }
  0x34   :  { %3214 = shalt.err (!%p3211_p9)
}
  0x35   :  { %88 = dma.hbm_to_vmem [thread:$0]  %s3727_s5, 512, %s83_s28, [#allocation12], %s3337_s13, %s3337_s13, %s3338_s14  }
  0x36   :  { %s3215_s20 = scalar_lea.hbm %s3722_s0, 512 }
  0x37   :  { %p3216_p10 = scmp.ne.s32.totalorder %s3722_s0, %s3215_s20  ;;  %p3219_p11 = scmp.lt.u32.totalorder %s3215_s20, %s3722_s0 }
  0x39   :  { %p3221_p12 = pnand %p3219_p11, %p3216_p10 }
  0x3b   :  { %3224 = shalt.err (!%p3221_p12)
}
  0x3c   :  { %s3225_s1 = scalar_lea.vmem %s3422_s30, 512  ;;  %p3230_p0 = scmp.lt.s32.totalorder %s3422_s30, %s3422_s30 }
  0x3d   :  { %p3226_p13 = scmp.ne.s32.totalorder %s3422_s30, %s3225_s1  ;;  %p3231_p1 = scmp.lt.s32.totalorder %s3225_s1, %s3225_s1 }
  0x3f   :  { %p3232_p2 = por %p3231_p1, %p3230_p0 }
  0x41   :  { %p3233_p3 = pnand %p3232_p2, %p3226_p13 }
  0x43   :  { %3236 = shalt.err (!%p3233_p3)
}
  0x44   :  { %28 = dma.hbm_to_vmem [thread:$0]  %s3722_s0, 512, %s3422_s30, [#allocation3], %s3337_s13, %s3337_s13, %s3338_s14  }
  0x45   :  { %s3341_s26 = smov [#allocation7]   ;;  %s3342_s29 = smov [#allocation10]  }
  0x46   :  { %s46_s28 = sshll.u32 %s3341_s26, 4  ;;  %s70_s8 = sshll.u32 %s3342_s29, 4  ;;  %s47_s28 = int_to_ptr.vmem [resolvable:$true] %s46_s28  ;;  %s3459_s8 = int_to_ptr.vmem [resolvable:$true] %s70_s8 }
  0x47   :  { %s3237_s11 = scalar_lea.hbm %s3724_s2, 6144 }
  0x48   :  { %p3238_p4 = scmp.ne.s32.totalorder %s3724_s2, %s3237_s11  ;;  %p3241_p5 = scmp.lt.u32.totalorder %s3237_s11, %s3724_s2 }
  0x4a   :  { %p3243_p6 = pnand %p3241_p5, %p3238_p4 }
  0x4c   :  { %3246 = shalt.err (!%p3243_p6)
}
  0x4d   :  { %s3247_s0 = scalar_lea.vmem %s47_s28, 6144  ;;  %p3252_p8 = scmp.lt.s32.totalorder %s47_s28, %s47_s28 }
  0x4e   :  { %p3248_p7 = scmp.ne.s32.totalorder %s47_s28, %s3247_s0  ;;  %p3253_p9 = scmp.lt.s32.totalorder %s3247_s0, %s3247_s0 }
  0x50   :  { %p3254_p10 = por %p3253_p9, %p3252_p8 }
  0x52   :  { %p3255_p11 = pnand %p3254_p10, %p3248_p7 }
  0x54   :  { %3258 = shalt.err (!%p3255_p11)
}
  0x55   :  { %52 = dma.hbm_to_vmem [thread:$0]  %s3724_s2, 6144, %s47_s28, [#allocation6], %s3337_s13, %s3337_s13, %s3338_s14  }
  0x56   :  { %s3259_s19 = scalar_lea.hbm %s3726_s4, 1536 }
  0x57   :  { %p3260_p12 = scmp.ne.s32.totalorder %s3726_s4, %s3259_s19  ;;  %p3263_p13 = scmp.lt.u32.totalorder %s3259_s19, %s3726_s4 }
  0x59   :  { %p3265_p0 = pnand %p3263_p13, %p3260_p12 }
  0x5b   :  { %3268 = shalt.err (!%p3265_p0)
}
  0x5c   :  { %s3269_s24 = scalar_lea.vmem %s3459_s8, 1536  ;;  %p3274_p2 = scmp.lt.s32.totalorder %s3459_s8, %s3459_s8 }
  0x5d   :  { %p3270_p1 = scmp.ne.s32.totalorder %s3459_s8, %s3269_s24  ;;  %p3275_p3 = scmp.lt.s32.totalorder %s3269_s24, %s3269_s24 }
  0x5f   :  { %p3276_p4 = por %p3275_p3, %p3274_p2 }
  0x61   :  { %p3277_p5 = pnand %p3276_p4, %p3270_p1 }
  0x63   :  { %3280 = shalt.err (!%p3277_p5)
}
  0x64   :  { %76 = dma.hbm_to_vmem [thread:$0]  %s3726_s4, 1536, %s3459_s8, [#allocation9], %s3337_s13, %s3337_s13, %s3338_s14  }
  0x65   :  { %s3343_s5 = smov [#allocation13]   ;;  %s3281_s29 = scalar_lea.hbm %s3728_s6, 2048 }
  0x66   :  { %s94_s25 = sshll.u32 %s3343_s5, 4  ;;  %p3282_p6 = scmp.ne.s32.totalorder %s3728_s6, %s3281_s29  ;;  %s95_s25 = int_to_ptr.vmem [resolvable:$true] %s94_s25 }
  0x67   :  { %p3285_p7 = scmp.lt.u32.totalorder %s3281_s29, %s3728_s6 }
  0x69   :  { %p3287_p8 = pnand %p3285_p7, %p3282_p6 }
  0x6b   :  { %3290 = shalt.err (!%p3287_p8)
}
  0x6c   :  { %s3291_s15 = scalar_lea.vmem %s95_s25, 2048  ;;  %p3296_p10 = scmp.lt.s32.totalorder %s95_s25, %s95_s25 }
  0x6d   :  { %p3292_p9 = scmp.ne.s32.totalorder %s95_s25, %s3291_s15  ;;  %p3297_p11 = scmp.lt.s32.totalorder %s3291_s15, %s3291_s15 }
  0x6f   :  { %p3298_p12 = por %p3297_p11, %p3296_p10 }
  0x71   :  { %p3299_p13 = pnand %p3298_p12, %p3292_p9 }
  0x73   :  { %3302 = shalt.err (!%p3299_p13)
}
  0x74   :  { %100 = dma.hbm_to_vmem [thread:$0]  %s3728_s6, 2048, %s95_s25, [#allocation12], %s3337_s13, %s3337_s13, %s3338_s14  }
  0x75   :  { %3325 = dma.done.wait [#allocation3], 512  }
  0x76   :  { %3326 = vsyncadd [#allocation3], 4294966784 }
  0x77   :  { %3327 = dma.done.wait [#allocation6], 12288  }
  0x78   :  { %3328 = vsyncadd [#allocation6], 4294955008 }
  0x79   :  { %3329 = dma.done.wait [#allocation9], 3072  }
  0x7a   :  { %3330 = vsyncadd [#allocation9], 4294964224 }
  0x7b   :  { %3331 = dma.done.wait [#allocation12], 2560  }
  0x7c   :  { %3332 = vsyncadd [#allocation12], 4294964736  ;;  %v143_v0 = vld [vmem:[#allocation5] sm:$0xff]  ;;  %v144_v1 = vld [vmem:[#allocation5 + $0x8] sm:$0xff]  ;;  %vm248_vm0 = vcmask 261120   ;;  %s3344_s6 = smov [#allocation14]  }
  0x7d   :  { %v145_v2 = vld [vmem:[#allocation5 + $0x10] sm:$0xff]  ;;  %v2719_v3 = vpack.c.bf16 %v144_v1, %v143_v0  ;;  %v146_v4 = vld [vmem:[#allocation5 + $0x18] sm:$0xff]  ;;  %v147_v6 = vld [vmem:[#allocation5 + $0x20] sm:$0xff]  ;;  %s1916_s16 = sshll.u32 %s3344_s6, 4  ;;  %s1917_s16 = int_to_ptr.vmem [resolvable:$true] %s1916_s16 }
  0x7e   :  { %v2723_v5 = vpack.c.bf16 %v146_v4, %v145_v2  ;;  %v148_v7 = vld [vmem:[#allocation5 + $0x28] sm:$0xff]  ;;  %v3511_v9 = vld [vmem:[#allocation2] sm:$0xff]  ;;  %v149_v10 = vld [vmem:[#allocation5 + $0x30] sm:$0xff]  ;;  %s3303_s3 = scalar_lea.vmem %s1917_s16, 512  ;;  %p3308_p1 = scmp.lt.s32.totalorder %s1917_s16, %s1917_s16 }
  0x7f   :  { %2720 = vmatprep.subr.bf16.mxu0 %v2719_v3  ;;  %v2727_v8 = vpack.c.bf16 %v148_v7, %v147_v6  ;;  %v150_v11 = vld [vmem:[#allocation5 + $0x38] sm:$0xff]  ;;  %2259 = vmatprep.mubr.f32.mxu0 %v3511_v9  ;;  %v151_v13 = vld [vmem:[#allocation5 + $0x40] sm:$0xff]  ;;  %v152_v14 = vld [vmem:[#allocation5 + $0x48] sm:$0xff]  ;;  %p3304_p0 = scmp.ne.s32.totalorder %s1917_s16, %s3303_s3  ;;  %p3309_p2 = scmp.lt.s32.totalorder %s3303_s3, %s3303_s3 }
  0x80   :  { %2722 = vmatpush3.bf16.msra.mxu0 %v2719_v3  ;;  %v2731_v12 = vpack.c.bf16 %v150_v11, %v149_v10  ;;  %v2735_v15 = vpack.c.bf16 %v152_v14, %v151_v13  ;;  %v153_v16 = vld [vmem:[#allocation5 + $0x50] sm:$0xff]  ;;  %v154_v17 = vld [vmem:[#allocation5 + $0x58] sm:$0xff]  ;;  %v155_v19 = vld [vmem:[#allocation5 + $0x60] sm:$0xff] }
  0x81   :  { %2724 = vmatprep.subr.bf16.mxu0 %v2723_v5  ;;  %v2739_v18 = vpack.c.bf16 %v154_v17, %v153_v16  ;;  %v156_v20 = vld [vmem:[#allocation5 + $0x68] sm:$0xff]  ;;  %v157_v22 = vld [vmem:[#allocation5 + $0x70] sm:$0xff]  ;;  %v158_v23 = vld [vmem:[#allocation5 + $0x78] sm:$0xff]  ;;  %p3310_p3 = por %p3309_p2, %p3308_p1 }
  0x82   :  { %v2743_v21 = vpack.c.bf16 %v156_v20, %v155_v19  ;;  %v2747_v24 = vpack.c.bf16 %v158_v23, %v157_v22  ;;  %v432_v25 = vld [vmem:[#allocation5 + $0x100] sm:$0xff]  ;;  %v433_v26 = vld [vmem:[#allocation5 + $0x108] sm:$0xff]  ;;  %v434_v28 = vld [vmem:[#allocation5 + $0x110] sm:$0xff] }
  0x83   :  { %v2791_v27 = vpack.c.bf16 %v433_v26, %v432_v25  ;;  %v435_v29 = vld [vmem:[#allocation5 + $0x118] sm:$0xff]  ;;  %v3514_v30 = vld [vmem:[#allocation2 + $0x8] sm:$0xff]  ;;  %v3516_v31 = vld [vmem:[#allocation2 + $0x10] sm:$0xff]  ;;  %p3311_p4 = pnand %p3310_p3, %p3304_p0 }
  0x84   :  { %2726 = vmatpush3.bf16.msra.mxu0 %v2723_v5  ;;  %v2795_v32 = vpack.c.bf16 %v435_v29, %v434_v28  ;;  %v436_v33 = vld [vmem:[#allocation5 + $0x120] sm:$0xff]  ;;  %v437_v34 = vld [vmem:[#allocation5 + $0x128] sm:$0xff]  ;;  %v3520_v35 = vld [vmem:[#allocation2 + $0x18] sm:$0xff] }
  0x85   :  { %2728 = vmatprep.subr.bf16.mxu0 %v2727_v8  ;;  %v2799_v36 = vpack.c.bf16 %v437_v34, %v436_v33  ;;  %v438_v37 = vld [vmem:[#allocation5 + $0x130] sm:$0xff]  ;;  %v439_v38 = vld [vmem:[#allocation5 + $0x138] sm:$0xff]  ;;  %v440_v40 = vld [vmem:[#allocation5 + $0x140] sm:$0xff] }
  0x86   :  { %v2803_v39 = vpack.c.bf16 %v439_v38, %v438_v37  ;;  %v441_v41 = vld [vmem:[#allocation5 + $0x148] sm:$0xff]  ;;  %v442_v43 = vld [vmem:[#allocation5 + $0x150] sm:$0xff]  ;;  %v443_v44 = vld [vmem:[#allocation5 + $0x158] sm:$0xff] }
  0x87   :  { %v2807_v42 = vpack.c.bf16 %v441_v41, %v440_v40  ;;  %v2811_v45 = vpack.c.bf16 %v443_v44, %v442_v43  ;;  %v444_v46 = vld [vmem:[#allocation5 + $0x160] sm:$0xff]  ;;  %v445_v47 = vld [vmem:[#allocation5 + $0x168] sm:$0xff]  ;;  %v446_v49 = vld [vmem:[#allocation5 + $0x170] sm:$0xff] }
  0x88   :  { %2730 = vmatpush3.bf16.msra.mxu0 %v2727_v8  ;;  %v2815_v48 = vpack.c.bf16 %v445_v47, %v444_v46  ;;  %v447_v50 = vld [vmem:[#allocation5 + $0x178] sm:$0xff]  ;;  %v244_v52 = vld [vmem:[#allocation8] sm:$0xff]  ;;  %v128_v57 = vld [vmem:[#allocation5 + $0x88] sm:$0xff] }
  0x89   :  { %2732 = vmatprep.subr.bf16.mxu0 %v2731_v12  ;;  %v2819_v51 = vpack.c.bf16 %v447_v50, %v446_v49  ;;  %2273 = vmatprep.mubr.msk.f32.mxu1 %vm248_vm0, %v244_v52  ;;  %v127_v56 = vld [vmem:[#allocation5 + $0x80] sm:$0xff]  ;;  %v129_v62 = vld [vmem:[#allocation5 + $0x90] sm:$0xff]  ;;  %v130_v63 = vld [vmem:[#allocation5 + $0x98] sm:$0xff] }
  0x8a   :  { %v2759_v61 = vpack.c.bf16 %v128_v57, %v127_v56  ;;  %v245_v0 = vld [vmem:[#allocation8 + $0x8] sm:$0xff]  ;;  %v2763_v1 = vpack.c.bf16 %v130_v63, %v129_v62  ;;  %v246_v2 = vld [vmem:[#allocation8 + $0x10] sm:$0xff]  ;;  %v131_v3 = vld [vmem:[#allocation5 + $0xa0] sm:$0xff] }
  0x8b   :  { %v132_v4 = vld [vmem:[#allocation5 + $0xa8] sm:$0xff]  ;;  %v247_v5 = vld [vmem:[#allocation8 + $0x18] sm:$0xff]  ;;  %v133_v7 = vld [vmem:[#allocation5 + $0xb0] sm:$0xff] }
  0x8c   :  { %2734 = vmatpush3.bf16.msra.mxu0 %v2731_v12  ;;  %v2767_v6 = vpack.c.bf16 %v132_v4, %v131_v3  ;;  %v134_v8 = vld [vmem:[#allocation5 + $0xb8] sm:$0xff]  ;;  %v135_v11 = vld [vmem:[#allocation5 + $0xc0] sm:$0xff]  ;;  %v136_v12 = vld [vmem:[#allocation5 + $0xc8] sm:$0xff] }
  0x8d   :  { %2736 = vmatprep.subr.bf16.mxu0 %v2735_v15  ;;  %v2771_v10 = vpack.c.bf16 %v134_v8, %v133_v7  ;;  %v2775_v13 = vpack.c.bf16 %v136_v12, %v135_v11  ;;  %v137_v14 = vld [vmem:[#allocation5 + $0xd0] sm:$0xff]  ;;  %v139_v17 = vld [vmem:[#allocation5 + $0xe0] sm:$0xff]  ;;  %v535_v29 = vld [vmem:[#allocation8 + $0x48] sm:$0xff] }
  0x8e   :  { %v141_v20 = vld [vmem:[#allocation5 + $0xf0] sm:$0xff]  ;;  %v534_v28 = vld [vmem:[#allocation8 + $0x40] sm:$0xff]  ;;  %v537_v33 = vld [vmem:[#allocation8 + $0x58] sm:$0xff] }
  0x8f   :  { %v741_v34 = vld [vmem:[#allocation13 + $0x8] sm:$0xff]  ;;  %v743_v37 = vld [vmem:[#allocation13 + $0x18] sm:$0xff] }
  0x90   :  { %2738 = vmatpush3.bf16.msra.mxu0 %v2735_v15  ;;  %v138_v15 = vld [vmem:[#allocation5 + $0xd8] sm:$0xff]  ;;  %v745_v40 = vld [vmem:[#allocation13 + $0x28] sm:$0xff] }
  0x91   :  { %2740 = vmatprep.subr.bf16.mxu0 %v2739_v18  ;;  %v2779_v16 = vpack.c.bf16 %v138_v15, %v137_v14  ;;  %v747_v43 = vld [vmem:[#allocation13 + $0x38] sm:$0xff]  ;;  %v749_v46 = vld [vmem:[#allocation13 + $0x48] sm:$0xff] }
  0x92   :  { %v751_v49 = vld [vmem:[#allocation13 + $0x58] sm:$0xff]  ;;  %v753_v52 = vld [vmem:[#allocation13 + $0x68] sm:$0xff] }
  0x93   :  { %v3575_v63 = vld [vmem:[#allocation11 + $0x8] sm:$0xff] }
  0x94   :  { %2742 = vmatpush3.bf16.msra.mxu0 %v2739_v18  ;;  %v140_v18 = vld [vmem:[#allocation5 + $0xe8] sm:$0xff] }
  0x95   :  { %2744 = vmatprep.subr.bf16.mxu0 %v2743_v21  ;;  %v2783_v19 = vpack.c.bf16 %v140_v18, %v139_v17 }
  0x98   :  { %2746 = vmatpush3.bf16.msra.mxu0 %v2743_v21  ;;  %v142_v21 = vld [vmem:[#allocation5 + $0xf8] sm:$0xff] }
  0x99   :  { %2748 = vmatprep.subr.bf16.mxu0 %v2747_v24  ;;  %v2787_v23 = vpack.c.bf16 %v142_v21, %v141_v20  ;;  %v1048_v21 = vld [vmem:[#allocation7] sm:$0xff] }
  0x9c   :  { %2750 = vmatpush3.bf16.msra.mxu0 %v2747_v24 }
  0x9d   :  { %2792 = vmatprep.subr.bf16.mxu0 %v2791_v27 }
  0x9f   :  { %2260 = vmatmul.mubr.f32.vlgmr.msra.gmra.mrb[0].mxu0 %v3514_v30 }
  0xa0   :  { %2262 = vmatprep.mubr.f32.mxu0 %v3516_v31  ;;  %2794 = vmatpush3.bf16.msra.mxu0 %v2791_v27 }
  0xa1   :  { %2796 = vmatprep.subr.bf16.mxu0 %v2795_v32 }
  0xa3   :  { %2263 = vmatmul.mubr.f32.gmra.mrb[2].mxu0 %v3520_v35 }
  0xa4   :  { %2798 = vmatpush3.bf16.msra.mxu0 %v2795_v32  ;;  %2349 = vmatprep.mubr.f32.mxu0 %v3511_v9  ;;  %v536_v32 = vld [vmem:[#allocation8 + $0x50] sm:$0xff] }
  0xa5   :  { %2800 = vmatprep.subr.bf16.mxu0 %v2799_v36 }
  0xa8   :  { %2802 = vmatpush3.bf16.msra.mxu0 %v2799_v36 }
  0xa9   :  { %2804 = vmatprep.subr.bf16.mxu0 %v2803_v39 }
  0xac   :  { %2806 = vmatpush3.bf16.msra.mxu0 %v2803_v39  ;;  %v744_v39 = vld [vmem:[#allocation13 + $0x20] sm:$0xff] }
  0xad   :  { %2808 = vmatprep.subr.bf16.mxu0 %v2807_v42  ;;  %v3550_v41 = vpack.c.bf16 %v745_v40, %v744_v39  ;;  %v1056_v39 = vld [vmem:[#allocation7 + $0x40] sm:$0xff]  ;;  %v1057_v40 = vld [vmem:[#allocation7 + $0x48] sm:$0xff] }
  0xb0   :  { %2810 = vmatpush3.bf16.msra.mxu0 %v2807_v42  ;;  %v746_v42 = vld [vmem:[#allocation13 + $0x30] sm:$0xff] }
  0xb1   :  { %2812 = vmatprep.subr.bf16.mxu0 %v2811_v45  ;;  %v3554_v44 = vpack.c.bf16 %v747_v43, %v746_v42  ;;  %v2927_v42 = vpack.c.bf16 %v1057_v40, %v1056_v39  ;;  %v1058_v43 = vld [vmem:[#allocation7 + $0x50] sm:$0xff] }
  0xb2   :  { %v1350_v40 = vld [vmem:[#allocation7 + $0x170] sm:$0xff] }
  0xb4   :  { %2814 = vmatpush3.bf16.msra.mxu0 %v2811_v45  ;;  %v748_v45 = vld [vmem:[#allocation13 + $0x40] sm:$0xff] }
  0xb5   :  { %2816 = vmatprep.subr.bf16.mxu0 %v2815_v48  ;;  %v3558_v47 = vpack.c.bf16 %v749_v46, %v748_v45  ;;  %v1059_v45 = vld [vmem:[#allocation7 + $0x58] sm:$0xff] }
  0xb6   :  { %v2931_v46 = vpack.c.bf16 %v1059_v45, %v1058_v43  ;;  %v1149_v45 = vld [vmem:[#allocation10] sm:$0xff] }
  0xb8   :  { %2818 = vmatpush3.bf16.msra.mxu0 %v2815_v48  ;;  %v750_v48 = vld [vmem:[#allocation13 + $0x50] sm:$0xff] }
  0xb9   :  { %2820 = vmatprep.subr.bf16.mxu0 %v2819_v51  ;;  %v3562_v50 = vpack.c.bf16 %v751_v49, %v750_v48  ;;  %v1060_v48 = vld [vmem:[#allocation7 + $0x60] sm:$0xff]  ;;  %v1061_v49 = vld [vmem:[#allocation7 + $0x68] sm:$0xff] }
  0xbc   :  { %2822 = vmatpush3.bf16.msra.mxu0 %v2819_v51  ;;  %v752_v51 = vld [vmem:[#allocation13 + $0x60] sm:$0xff] }
  0xbf   :  { %2350 = vmatmul.mubr.f32.vlgmr.msra.gmra.mrb[4].mxu0 %v3514_v30 }
  0xc0   :  { %2352 = vmatprep.mubr.f32.mxu0 %v3516_v31 }
  0xc3   :  { %2353 = vmatmul.mubr.f32.gmra.mrb[6].mxu0 %v3520_v35 }
 0x172   :  { %v2261_v53 = vpop.f32.mrb[0].mxu0 }
 0x173   :  { %v225_v54 = vpop.f32.mrb[1].mxu0 }
 0x174   :  { %v2751_v55 = vpack.c.bf16 %v2261_v53, %v225_v54  ;;  %v3566_v53 = vpack.c.bf16 %v753_v52, %v752_v51  ;;  %v754_v54 = vld [vmem:[#allocation13 + $0x70] sm:$0xff]  ;;  %v2935_v51 = vpack.c.bf16 %v1061_v49, %v1060_v48 }
 0x175   :  { %v1062_v52 = vld [vmem:[#allocation7 + $0x70] sm:$0xff] }
 0x176   :  { %v2264_v58 = vpop.f32.mrb[2].mxu0  ;;  %2752 = vmatprep.subr.bf16.mxu1 %v2751_v55 }
 0x177   :  { %v235_v59 = vpop.f32.mrb[3].mxu0  ;;  %2754 = vmatpush3.bf16.msra.mxu1 %v2751_v55  ;;  %v755_v55 = vld [vmem:[#allocation13 + $0x78] sm:$0xff] }
 0x178   :  { %v2755_v60 = vpack.c.bf16 %v2264_v58, %v235_v59  ;;  %v3570_v56 = vpack.c.bf16 %v755_v55, %v754_v54  ;;  %v1063_v54 = vld [vmem:[#allocation7 + $0x78] sm:$0xff] }
 0x179   :  { %v2939_v55 = vpack.c.bf16 %v1063_v54, %v1062_v52  ;;  %v1033_v52 = vld [vmem:[#allocation7 + $0x88] sm:$0xff] }
 0x17a   :  { %2756 = vmatprep.subr.bf16.mxu1 %v2755_v60 }
 0x17b   :  { %2758 = vmatpush3.bf16.msra.mxu1 %v2755_v60 }
 0x17c   :  { %2760 = vmatprep.subr.bf16.mxu1 %v2759_v61 }
 0x17e   :  { %2274 = vmatmul.mubr.msk.f32.vlgmr.msra.gmra.mrb[0].mxu1 %vm248_vm0, %v245_v0  ;;  %v3577_v0 = vld [vmem:[#allocation11 + $0x10] sm:$0xff] }
 0x17f   :  { %2762 = vmatpush3.bf16.msra.mxu1 %v2759_v61  ;;  %2276 = vmatprep.mubr.msk.f32.mxu1 %vm248_vm0, %v246_v2 }
 0x180   :  { %2764 = vmatprep.subr.bf16.mxu1 %v2763_v1 }
 0x182   :  { %2277 = vmatmul.mubr.msk.f32.gmra.mrb[2].mxu1 %vm248_vm0, %v247_v5 }
 0x183   :  { %2766 = vmatpush3.bf16.msra.mxu1 %v2763_v1  ;;  %2311 = vmatprep.mubr.f32.mxu1 %v3511_v9  ;;  %v3584_v1 = vld [vmem:[#allocation11 + $0x18] sm:$0xff] }
 0x184   :  { %2768 = vmatprep.subr.bf16.mxu1 %v2767_v6 }
 0x187   :  { %2770 = vmatpush3.bf16.msra.mxu1 %v2767_v6 }
 0x188   :  { %2772 = vmatprep.subr.bf16.mxu1 %v2771_v10 }
 0x18b   :  { %2774 = vmatpush3.bf16.msra.mxu1 %v2771_v10 }
 0x18c   :  { %2776 = vmatprep.subr.bf16.mxu1 %v2775_v13 }
 0x18f   :  { %2778 = vmatpush3.bf16.msra.mxu1 %v2775_v13 }
 0x190   :  { %2780 = vmatprep.subr.bf16.mxu1 %v2779_v16 }
 0x192   :  { %v2351_v9 = vpop.f32.mrb[4].mxu0 }
 0x193   :  { %2782 = vmatpush3.bf16.msra.mxu1 %v2779_v16  ;;  %v514_v22 = vpop.f32.mrb[5].mxu0 }
 0x194   :  { %2784 = vmatprep.subr.bf16.mxu1 %v2783_v19  ;;  %v2823_v24 = vpack.c.bf16 %v2351_v9, %v514_v22  ;;  %v1049_v9 = vld [vmem:[#allocation7 + $0x8] sm:$0xff]  ;;  %v1050_v22 = vld [vmem:[#allocation7 + $0x10] sm:$0xff] }
 0x196   :  { %v2354_v25 = vpop.f32.mrb[6].mxu0 }
 0x197   :  { %2786 = vmatpush3.bf16.msra.mxu1 %v2783_v19  ;;  %v524_v26 = vpop.f32.mrb[7].mxu0 }
 0x198   :  { %2788 = vmatprep.subr.bf16.mxu1 %v2787_v23  ;;  %v2827_v27 = vpack.c.bf16 %v2354_v25, %v524_v26  ;;  %v1052_v26 = vld [vmem:[#allocation7 + $0x20] sm:$0xff] }
 0x19b   :  { %2790 = vmatpush3.bf16.msra.mxu1 %v2787_v23  ;;  %v2911_v23 = vpack.c.bf16 %v1049_v9, %v1048_v21 }
 0x19c   :  { %2824 = vmatprep.subr.bf16.mxu1 %v2823_v24 }
 0x19e   :  { %2312 = vmatmul.mubr.f32.vlgmr.msra.gmra.mrb[0].mxu1 %v3514_v30  ;;  %v3539_v30 = vld [vmem:[#allocation11] sm:$0xff] }
 0x19f   :  { %2826 = vmatpush3.bf16.msra.mxu1 %v2823_v24  ;;  %2314 = vmatprep.mubr.f32.mxu1 %v3516_v31  ;;  %v740_v31 = vld [vmem:[#allocation13] sm:$0xff]  ;;  %v1051_v24 = vld [vmem:[#allocation7 + $0x18] sm:$0xff] }
 0x1a0   :  { %2828 = vmatprep.subr.bf16.mxu1 %v2827_v27  ;;  %v3543_v36 = vpack.c.bf16 %v741_v34, %v740_v31  ;;  %v2915_v25 = vpack.c.bf16 %v1051_v24, %v1050_v22  ;;  %v1340_v24 = vld [vmem:[#allocation7 + $0x120] sm:$0xff] }
 0x1a2   :  { %2315 = vmatmul.mubr.f32.gmra.mrb[2].mxu1 %v3520_v35  ;;  %v742_v35 = vld [vmem:[#allocation13 + $0x10] sm:$0xff]  ;;  %2880 = vmatprep.subr.bf16.mxu0 %v3543_v36 }
 0x1a3   :  { %2830 = vmatpush3.bf16.msra.mxu1 %v2827_v27  ;;  %2363 = vmatprep.mubr.msk.f32.mxu1 %vm248_vm0, %v534_v28  ;;  %v3545_v38 = vpack.c.bf16 %v743_v37, %v742_v35  ;;  %v1053_v27 = vld [vmem:[#allocation7 + $0x28] sm:$0xff] }
 0x1a4   :  { %2882 = vmatpush3.bf16.msra.mxu0 %v3543_v36  ;;  %v2919_v28 = vpack.c.bf16 %v1053_v27, %v1052_v26  ;;  %v1342_v27 = vld [vmem:[#allocation7 + $0x130] sm:$0xff] }
 0x1a5   :  { %2884 = vmatprep.subr.bf16.mxu0 %v3545_v38 }
 0x1a6   :  { %2364 = vmatmul.mubr.msk.f32.vlgmr.msra.gmra.mrb[0].mxu1 %vm248_vm0, %v535_v29  ;;  %v1054_v29 = vld [vmem:[#allocation7 + $0x30] sm:$0xff] }
 0x1a7   :  { %2366 = vmatprep.mubr.msk.f32.mxu1 %vm248_vm0, %v536_v32  ;;  %v1055_v32 = vld [vmem:[#allocation7 + $0x38] sm:$0xff] }
 0x1a8   :  { %2886 = vmatpush3.bf16.msra.mxu0 %v3545_v38 }
 0x1a9   :  { %2888 = vmatprep.subr.bf16.mxu0 %v3550_v41 }
 0x1aa   :  { %2367 = vmatmul.mubr.msk.f32.gmra.mrb[2].mxu1 %vm248_vm0, %v537_v33  ;;  %v2923_v33 = vpack.c.bf16 %v1055_v32, %v1054_v29  ;;  %v1345_v29 = vld [vmem:[#allocation7 + $0x148] sm:$0xff] }
 0x1ab   :  { %2377 = vmatprep.mubr.msk.f32.mxu1 %vm248_vm0, %v3539_v30 }
 0x1ac   :  { %2890 = vmatpush3.bf16.msra.mxu0 %v3550_v41 }
 0x1ad   :  { %2892 = vmatprep.subr.bf16.mxu0 %v3554_v44 }
 0x1b0   :  { %2894 = vmatpush3.bf16.msra.mxu0 %v3554_v44 }
 0x1b1   :  { %2896 = vmatprep.subr.bf16.mxu0 %v3558_v47 }
 0x1b4   :  { %2898 = vmatpush3.bf16.msra.mxu0 %v3558_v47 }
 0x1b5   :  { %2900 = vmatprep.subr.bf16.mxu0 %v3562_v50 }
 0x1b8   :  { %2902 = vmatpush3.bf16.msra.mxu0 %v3562_v50 }
 0x1b9   :  { %2904 = vmatprep.subr.bf16.mxu0 %v3566_v53 }
 0x1bc   :  { %2906 = vmatpush3.bf16.msra.mxu0 %v3566_v53 }
 0x1bd   :  { %2908 = vmatprep.subr.bf16.mxu0 %v3570_v56 }
 0x1c0   :  { %2910 = vmatpush3.bf16.msra.mxu0 %v3570_v56 }
 0x279   :  { %v2365_v57 = vpop.f32.mrb[0].mxu1 }
 0x27a   :  { %v616_v58 = vpop.f32.mrb[1].mxu1 }
 0x27b   :  { %v2831_v59 = vpack.c.bf16 %v2365_v57, %v616_v58 }
 0x27d   :  { %v2368_v60 = vpop.f32.mrb[2].mxu1  ;;  %2832 = vmatprep.subr.bf16.mxu1 %v2831_v59 }
 0x27e   :  { %v626_v61 = vpop.f32.mrb[3].mxu1  ;;  %2834 = vmatpush3.bf16.msra.mxu1 %v2831_v59 }
 0x27f   :  { %v2835_v62 = vpack.c.bf16 %v2368_v60, %v626_v61 }
 0x281   :  { %2836 = vmatprep.subr.bf16.mxu1 %v2835_v62 }
 0x282   :  { %2838 = vmatpush3.bf16.msra.mxu1 %v2835_v62 }
 0x283   :  { %2840 = vmatprep.subr.bf16.mxu1 %v3543_v36 }
 0x285   :  { %2378 = vmatmul.mubr.msk.f32.vlgmr.msra.gmra.mrb[4].mxu1 %vm248_vm0, %v3575_v63 }
 0x286   :  { %2380 = vmatprep.mubr.msk.f32.mxu1 %vm248_vm0, %v3577_v0  ;;  %2842 = vmatpush3.bf16.msra.mxu1 %v3543_v36 }
 0x287   :  { %2844 = vmatprep.subr.bf16.mxu1 %v3545_v38 }
 0x289   :  { %2381 = vmatmul.mubr.msk.f32.gmra.mrb[6].mxu1 %vm248_vm0, %v3584_v1 }
 0x28a   :  { %2846 = vmatpush3.bf16.msra.mxu1 %v3545_v38 }
 0x28b   :  { %2848 = vmatprep.subr.bf16.mxu1 %v3550_v41 }
 0x28e   :  { %2850 = vmatpush3.bf16.msra.mxu1 %v3550_v41 }
 0x28f   :  { %2852 = vmatprep.subr.bf16.mxu1 %v3554_v44 }
 0x292   :  { %2854 = vmatpush3.bf16.msra.mxu1 %v3554_v44 }
 0x293   :  { %2856 = vmatprep.subr.bf16.mxu1 %v3558_v47 }
 0x296   :  { %2858 = vmatpush3.bf16.msra.mxu1 %v3558_v47 }
 0x297   :  { %2860 = vmatprep.subr.bf16.mxu1 %v3562_v50 }
 0x29a   :  { %2862 = vmatpush3.bf16.msra.mxu1 %v3562_v50 }
 0x29b   :  { %2864 = vmatprep.subr.bf16.mxu1 %v3566_v53 }
 0x29e   :  { %2866 = vmatpush3.bf16.msra.mxu1 %v3566_v53 }
 0x29f   :  { %2868 = vmatprep.subr.bf16.mxu1 %v3570_v56 }
 0x2a2   :  { %2870 = vmatpush3.bf16.msra.mxu1 %v3570_v56 }
 0x358   :  { %v2379_v2 = vpop.f32.mrb[4].mxu1 }
 0x359   :  { %v721_v3 = vpop.f32.mrb[5].mxu1 }
 0x35a   :  { %2415 = vmatprep.mubr.f32.mxu1 %v721_v3 }
 0x35b   :  { %2416 = vmatmul.mubr.f32.vlgmr.msra.gmra.mrb[8].mxu1 %v2379_v2 }
 0x35c   :  { %v2382_v4 = vpop.f32.mrb[6].mxu1 }
 0x35d   :  { %v731_v5 = vpop.f32.mrb[7].mxu1 }
 0x35e   :  { %2418 = vmatprep.mubr.f32.mxu1 %v731_v5 }
 0x35f   :  { %2419 = vmatmul.mubr.f32.gmra.mrb[10].mxu1 %v2382_v4 }
 0x360   :  { %2429 = vmatprep.mubr.msk.f32.mxu1 %vm248_vm0, %v3539_v30 }
 0x42e   :  { %v2417_v6 = vpop.f32.mrb[8].mxu1 }
 0x42f   :  { %v3605_v7 = vsub.f32 %v2365_v57, %v2417_v6  ;;  %v822_v8 = vpop.f32.mrb[9].mxu1  ;;  %v1336_v57 = vld [vmem:[#allocation7 + $0x100] sm:$0xff] }
 0x430   :  { %v3607_v10 = vsub.f32 %v616_v58, %v822_v8  ;;  %v1337_v58 = vld [vmem:[#allocation7 + $0x108] sm:$0xff] }
 0x431   :  { %v846_v11 = vmul.f32 %v3605_v7, %v3605_v7  ;;  %v2983_v59 = vpack.c.bf16 %v1337_v58, %v1336_v57 }
 0x432   :  { %v845_v12 = vmul.f32 %v3607_v10, %v3607_v10  ;;  %v2420_v13 = vpop.f32.mrb[10].mxu1 }
 0x433   :  { %v3613_v14 = vsub.f32 %v2368_v60, %v2420_v13  ;;  %v832_v15 = vpop.f32.mrb[11].mxu1 }
 0x434   :  { %v3615_v16 = vsub.f32 %v626_v61, %v832_v15  ;;  %v2871_v17 = vpack.c.bf16 %v846_v11, %v845_v12  ;;  %v1338_v15 = vld [vmem:[#allocation7 + $0x110] sm:$0xff] }
 0x435   :  { %v848_v18 = vmul.f32 %v3613_v14, %v3613_v14 }
 0x436   :  { %v847_v19 = vmul.f32 %v3615_v16, %v3615_v16  ;;  %2872 = vmatprep.subr.bf16.mxu1 %v2871_v17 }
 0x437   :  { %2874 = vmatpush3.bf16.msra.mxu1 %v2871_v17  ;;  %v1339_v17 = vld [vmem:[#allocation7 + $0x118] sm:$0xff] }
 0x438   :  { %v2875_v20 = vpack.c.bf16 %v848_v18, %v847_v19  ;;  %v2987_v9 = vpack.c.bf16 %v1339_v17, %v1338_v15  ;;  %v1041_v15 = vld [vmem:[#allocation7 + $0xc8] sm:$0xff] }
 0x43a   :  { %2876 = vmatprep.subr.bf16.mxu1 %v2875_v20 }
 0x43b   :  { %2878 = vmatpush3.bf16.msra.mxu1 %v2875_v20 }
 0x43c   :  { %2912 = vmatprep.subr.bf16.mxu1 %v2911_v23 }
 0x43e   :  { %2430 = vmatmul.mubr.msk.f32.vlgmr.msra.gmra.mrb[12].mxu1 %vm248_vm0, %v3575_v63 }
 0x43f   :  { %2432 = vmatprep.mubr.msk.f32.mxu1 %vm248_vm0, %v3577_v0  ;;  %2914 = vmatpush3.bf16.msra.mxu1 %v2911_v23 }
 0x440   :  { %2916 = vmatprep.subr.bf16.mxu1 %v2915_v25 }
 0x442   :  { %2433 = vmatmul.mubr.msk.f32.gmra.mrb[14].mxu1 %vm248_vm0, %v3584_v1 }
 0x443   :  { %2918 = vmatpush3.bf16.msra.mxu1 %v2915_v25  ;;  %v1341_v25 = vld [vmem:[#allocation7 + $0x128] sm:$0xff] }
 0x444   :  { %2920 = vmatprep.subr.bf16.mxu1 %v2919_v28  ;;  %v2991_v26 = vpack.c.bf16 %v1341_v25, %v1340_v24  ;;  %v1046_v25 = vld [vmem:[#allocation7 + $0xf0] sm:$0xff] }
 0x447   :  { %2922 = vmatpush3.bf16.msra.mxu1 %v2919_v28  ;;  %v1343_v28 = vld [vmem:[#allocation7 + $0x138] sm:$0xff] }
 0x448   :  { %2924 = vmatprep.subr.bf16.mxu1 %v2923_v33 }
 0x44b   :  { %2926 = vmatpush3.bf16.msra.mxu1 %v2923_v33  ;;  %v1346_v33 = vld [vmem:[#allocation7 + $0x150] sm:$0xff] }
 0x44c   :  { %2928 = vmatprep.subr.bf16.mxu1 %v2927_v42 }
 0x44f   :  { %2930 = vmatpush3.bf16.msra.mxu1 %v2927_v42  ;;  %v1351_v42 = vld [vmem:[#allocation7 + $0x178] sm:$0xff] }
 0x450   :  { %2932 = vmatprep.subr.bf16.mxu1 %v2931_v46  ;;  %v3011_v43 = vpack.c.bf16 %v1351_v42, %v1350_v40 }
 0x453   :  { %2934 = vmatpush3.bf16.msra.mxu1 %v2931_v46 }
 0x454   :  { %2936 = vmatprep.subr.bf16.mxu1 %v2935_v51 }
 0x457   :  { %2938 = vmatpush3.bf16.msra.mxu1 %v2935_v51  ;;  %v1032_v51 = vld [vmem:[#allocation7 + $0x80] sm:$0xff] }
 0x458   :  { %2940 = vmatprep.subr.bf16.mxu1 %v2939_v55  ;;  %v2951_v58 = vpack.c.bf16 %v1033_v52, %v1032_v51 }
 0x45b   :  { %2942 = vmatpush3.bf16.msra.mxu1 %v2939_v55 }
 0x45c   :  { %2984 = vmatprep.subr.bf16.mxu1 %v2983_v59 }
 0x511   :  { %v2431_v31 = vpop.f32.mrb[12].mxu1 }
 0x512   :  { %v915_v34 = vpop.f32.mrb[13].mxu1 }
 0x513   :  { %2467 = vmatprep.mubr.f32.mxu0 %v915_v34 }
 0x514   :  { %2468 = vmatmul.mubr.f32.vlgmr.msra.gmra.mrb[8].mxu0 %v2431_v31  ;;  %v1347_v31 = vld [vmem:[#allocation7 + $0x158] sm:$0xff] }
 0x515   :  { %v2434_v35 = vpop.f32.mrb[14].mxu1  ;;  %v3003_v34 = vpack.c.bf16 %v1347_v31, %v1346_v33  ;;  %v1438_v33 = vld [vmem:[#allocation10 + $0x40] sm:$0xff]  ;;  %v1439_v31 = vld [vmem:[#allocation10 + $0x48] sm:$0xff] }
 0x516   :  { %v925_v37 = vpop.f32.mrb[15].mxu1 }
 0x517   :  { %2470 = vmatprep.mubr.f32.mxu0 %v925_v37  ;;  %v1349_v37 = vld [vmem:[#allocation7 + $0x168] sm:$0xff] }
 0x518   :  { %2471 = vmatmul.mubr.f32.gmra.mrb[10].mxu0 %v2434_v35  ;;  %v1348_v35 = vld [vmem:[#allocation7 + $0x160] sm:$0xff] }
 0x519   :  { %v3007_v39 = vpack.c.bf16 %v1349_v37, %v1348_v35  ;;  %2519 = vmatprep.mubr.msk.f32.mxu0 %vm248_vm0, %v1149_v45  ;;  %v1441_v35 = vld [vmem:[#allocation10 + $0x58] sm:$0xff] }
 0x5e7   :  { %v2469_v60 = vpop.f32.mrb[8].mxu0 }
 0x5e8   :  { %v1006_v61 = vadd.f32 1e-05, %v2469_v60  ;;  %v1000_v62 = vpop.f32.mrb[9].mxu0  ;;  %v1035_v60 = vld [vmem:[#allocation7 + $0x98] sm:$0xff] }
 0x5e9   :  { %v1001_v2 = vadd.f32 1e-05, %v1000_v62  ;;  %v1151_v62 = vld [vmem:[#allocation10 + $0x10] sm:$0xff] }
 0x5ea   :  { %3129 = vrsqrt.f32 %v1006_v61  ;;  %v1150_v61 = vld [vmem:[#allocation10 + $0x8] sm:$0xff] }
 0x5eb   :  { %3131 = vrsqrt.f32 %v1001_v2  ;;  %v2472_v3 = vpop.f32.mrb[10].mxu0 }
 0x5ec   :  { %v1016_v4 = vadd.f32 1e-05, %v2472_v3  ;;  %v1010_v5 = vpop.f32.mrb[11].mxu0  ;;  %v1036_v3 = vld [vmem:[#allocation7 + $0xa0] sm:$0xff] }
 0x5ed   :  { %v1011_v6 = vadd.f32 1e-05, %v1010_v5  ;;  %v1152_v5 = vld [vmem:[#allocation10 + $0x18] sm:$0xff] }
 0x5ee   :  { %3133 = vrsqrt.f32 %v1016_v4  ;;  %v1037_v4 = vld [vmem:[#allocation7 + $0xa8] sm:$0xff] }
 0x5ef   :  { %3135 = vrsqrt.f32 %v1011_v6  ;;  %v2959_v6 = vpack.c.bf16 %v1037_v4, %v1036_v3 }
 0x5f4   :  { %v3130_v8 = vpop.eup %3129 }
 0x5f5   :  { %v3132_v11 = vpop.eup %3131  ;;  %v1024_v12 = vmul.f32 %v3130_v8, %v3605_v7  ;;  %v1038_v8 = vld [vmem:[#allocation7 + $0xb0] sm:$0xff] }
 0x5f6   :  { %v1023_v13 = vmul.f32 %v3132_v11, %v3607_v10  ;;  %v1039_v11 = vld [vmem:[#allocation7 + $0xb8] sm:$0xff] }
 0x5f7   :  { %v3631_v21 = vmax.f32 %v1024_v12, 0.0  ;;  %v2963_v12 = vpack.c.bf16 %v1039_v11, %v1038_v8  ;;  %v3145_v11 = vld [vmem:[#allocation2 + $0x8] sm:$0xff] }
 0x5f8   :  { %v3134_v18 = vpop.eup %3133  ;;  %v3629_v19 = vmax.f32 %v1023_v13, 0.0  ;;  %v1040_v13 = vld [vmem:[#allocation7 + $0xc0] sm:$0xff] }
 0x5f9   :  { %v3136_v20 = vpop.eup %3135  ;;  %v1026_v22 = vmul.f32 %v3134_v18, %v3613_v14  ;;  %v2995_v14 = vpack.c.bf16 %v1343_v28, %v1342_v27  ;;  %v2967_v17 = vpack.c.bf16 %v1041_v15, %v1040_v13  ;;  %v1042_v18 = vld [vmem:[#allocation7 + $0xd0] sm:$0xff]  ;;  %v3146_v15 = vld [vmem:[#allocation2] sm:$0xff] }
 0x5fa   :  { %2505 = vmatprep.mubr.f32.mxu1 %v3629_v19  ;;  %v1025_v23 = vmul.f32 %v3136_v20, %v3615_v16  ;;  %v1344_v16 = vld [vmem:[#allocation7 + $0x140] sm:$0xff]  ;;  %v1043_v20 = vld [vmem:[#allocation7 + $0xd8] sm:$0xff] }
 0x5fb   :  { %2506 = vmatmul.mubr.f32.vlgmr.msra.gmra.mrb[16].mxu1 %v3631_v21  ;;  %v3639_v10 = vmax.f32 %v1026_v22, 0.0  ;;  %v2999_v32 = vpack.c.bf16 %v1345_v29, %v1344_v16  ;;  %v1044_v22 = vld [vmem:[#allocation7 + $0xe0] sm:$0xff] }
 0x5fc   :  { %2986 = vmatpush3.bf16.msra.mxu1 %v2983_v59  ;;  %v3637_v7 = vmax.f32 %v1025_v23, 0.0  ;;  %v1034_v59 = vld [vmem:[#allocation7 + $0x90] sm:$0xff]  ;;  %v1045_v23 = vld [vmem:[#allocation7 + $0xe8] sm:$0xff] }
 0x5fd   :  { %2988 = vmatprep.subr.bf16.mxu1 %v2987_v9  ;;  %v2955_v2 = vpack.c.bf16 %v1035_v60, %v1034_v59  ;;  %v2975_v24 = vpack.c.bf16 %v1045_v23, %v1044_v22 }
 0x5fe   :  { %2508 = vmatprep.mubr.f32.mxu1 %v3637_v7 }
 0x5ff   :  { %2509 = vmatmul.mubr.f32.gmra.mrb[18].mxu1 %v3639_v10 }
 0x600   :  { %2990 = vmatpush3.bf16.msra.mxu1 %v2987_v9  ;;  %2595 = vmatprep.mubr.f32.mxu1 %v3629_v19  ;;  %v2971_v9 = vpack.c.bf16 %v1043_v20, %v1042_v18 }
 0x601   :  { %2992 = vmatprep.subr.bf16.mxu1 %v2991_v26 }
 0x604   :  { %2994 = vmatpush3.bf16.msra.mxu1 %v2991_v26  ;;  %v1047_v26 = vld [vmem:[#allocation7 + $0xf8] sm:$0xff] }
 0x605   :  { %2996 = vmatprep.subr.bf16.mxu1 %v2995_v14 }
 0x608   :  { %2998 = vmatpush3.bf16.msra.mxu1 %v2995_v14  ;;  %v2979_v14 = vpack.c.bf16 %v1047_v26, %v1046_v25  ;;  %v3148_v26 = vld [vmem:[#allocation2 + $0x10] sm:$0xff] }
 0x609   :  { %3000 = vmatprep.subr.bf16.mxu1 %v2999_v32 }
 0x60c   :  { %3002 = vmatpush3.bf16.msra.mxu1 %v2999_v32 }
 0x60d   :  { %3004 = vmatprep.subr.bf16.mxu1 %v3003_v34 }
 0x610   :  { %3006 = vmatpush3.bf16.msra.mxu1 %v3003_v34  ;;  %v1440_v34 = vld [vmem:[#allocation10 + $0x50] sm:$0xff] }
 0x611   :  { %3008 = vmatprep.subr.bf16.mxu1 %v3007_v39 }
 0x614   :  { %3010 = vmatpush3.bf16.msra.mxu1 %v3007_v39 }
 0x615   :  { %3012 = vmatprep.subr.bf16.mxu1 %v3011_v43 }
 0x618   :  { %3014 = vmatpush3.bf16.msra.mxu1 %v3011_v43 }
 0x619   :  { %3032 = vmatprep.subr.bf16.mxu1 %v3543_v36 }
 0x61b   :  { %2596 = vmatmul.mubr.f32.vlgmr.msra.gmra.mrb[20].mxu1 %v3631_v21 }
 0x61c   :  { %2598 = vmatprep.mubr.f32.mxu1 %v3637_v7  ;;  %3034 = vmatpush3.bf16.msra.mxu1 %v3543_v36 }
 0x61d   :  { %3036 = vmatprep.subr.bf16.mxu1 %v3545_v38 }
 0x61f   :  { %2599 = vmatmul.mubr.f32.gmra.mrb[22].mxu1 %v3639_v10 }
 0x620   :  { %3038 = vmatpush3.bf16.msra.mxu1 %v3545_v38 }
 0x621   :  { %3040 = vmatprep.subr.bf16.mxu1 %v3550_v41 }
 0x624   :  { %3042 = vmatpush3.bf16.msra.mxu1 %v3550_v41 }
 0x625   :  { %3044 = vmatprep.subr.bf16.mxu1 %v3554_v44 }
 0x628   :  { %3046 = vmatpush3.bf16.msra.mxu1 %v3554_v44 }
 0x629   :  { %3048 = vmatprep.subr.bf16.mxu1 %v3558_v47 }
 0x62c   :  { %3050 = vmatpush3.bf16.msra.mxu1 %v3558_v47 }
 0x62d   :  { %3052 = vmatprep.subr.bf16.mxu1 %v3562_v50 }
 0x630   :  { %3054 = vmatpush3.bf16.msra.mxu1 %v3562_v50 }
 0x631   :  { %3056 = vmatprep.subr.bf16.mxu1 %v3566_v53 }
 0x634   :  { %3058 = vmatpush3.bf16.msra.mxu1 %v3566_v53 }
 0x635   :  { %3060 = vmatprep.subr.bf16.mxu1 %v3570_v56 }
 0x638   :  { %3062 = vmatpush3.bf16.msra.mxu1 %v3570_v56 }
 0x6ce   :  { %v2507_v46 = vpop.f32.mrb[16].mxu1 }
 0x6cf   :  { %v1130_v48 = vpop.f32.mrb[17].mxu1 }
 0x6d0   :  { %v2943_v49 = vpack.c.bf16 %v2507_v46, %v1130_v48 }
 0x6d2   :  { %v2510_v54 = vpop.f32.mrb[18].mxu1  ;;  %2944 = vmatprep.subr.bf16.mxu0 %v2943_v49 }
 0x6d3   :  { %v1140_v55 = vpop.f32.mrb[19].mxu1  ;;  %2946 = vmatpush3.bf16.msra.mxu0 %v2943_v49 }
 0x6d4   :  { %v2947_v57 = vpack.c.bf16 %v2510_v54, %v1140_v55 }
 0x6d6   :  { %2948 = vmatprep.subr.bf16.mxu0 %v2947_v57 }
 0x6d7   :  { %2950 = vmatpush3.bf16.msra.mxu0 %v2947_v57 }
 0x6d8   :  { %2952 = vmatprep.subr.bf16.mxu0 %v2951_v58 }
 0x6da   :  { %2520 = vmatmul.mubr.msk.f32.vlgmr.msra.gmra.mrb[12].mxu0 %vm248_vm0, %v1150_v61 }
 0x6db   :  { %2954 = vmatpush3.bf16.msra.mxu0 %v2951_v58  ;;  %2522 = vmatprep.mubr.msk.f32.mxu0 %vm248_vm0, %v1151_v62 }
 0x6dc   :  { %2956 = vmatprep.subr.bf16.mxu0 %v2955_v2 }
 0x6de   :  { %2523 = vmatmul.mubr.msk.f32.gmra.mrb[14].mxu0 %vm248_vm0, %v1152_v5 }
 0x6df   :  { %2958 = vmatpush3.bf16.msra.mxu0 %v2955_v2  ;;  %2557 = vmatprep.mubr.f32.mxu0 %v3629_v19 }
 0x6e0   :  { %2960 = vmatprep.subr.bf16.mxu0 %v2959_v6 }
 0x6e3   :  { %2962 = vmatpush3.bf16.msra.mxu0 %v2959_v6 }
 0x6e4   :  { %2964 = vmatprep.subr.bf16.mxu0 %v2963_v12 }
 0x6e7   :  { %2966 = vmatpush3.bf16.msra.mxu0 %v2963_v12 }
 0x6e8   :  { %2968 = vmatprep.subr.bf16.mxu0 %v2967_v17 }
 0x6eb   :  { %2970 = vmatpush3.bf16.msra.mxu0 %v2967_v17 }
 0x6ec   :  { %2972 = vmatprep.subr.bf16.mxu0 %v2971_v9 }
 0x6ee   :  { %v2597_v19 = vpop.f32.mrb[20].mxu1 }
 0x6ef   :  { %v1418_v27 = vpop.f32.mrb[21].mxu1  ;;  %2974 = vmatpush3.bf16.msra.mxu0 %v2971_v9 }
 0x6f0   :  { %v3015_v28 = vpack.c.bf16 %v2597_v19, %v1418_v27  ;;  %2976 = vmatprep.subr.bf16.mxu0 %v2975_v24 }
 0x6f2   :  { %v2600_v16 = vpop.f32.mrb[22].mxu1 }
 0x6f3   :  { %v1428_v29 = vpop.f32.mrb[23].mxu1  ;;  %2978 = vmatpush3.bf16.msra.mxu0 %v2975_v24  ;;  %v3147_v24 = vld [vmem:[#allocation2 + $0x18] sm:$0xff] }
 0x6f4   :  { %v3019_v32 = vpack.c.bf16 %v2600_v16, %v1428_v29  ;;  %2980 = vmatprep.subr.bf16.mxu0 %v2979_v14 }
 0x6f7   :  { %2982 = vmatpush3.bf16.msra.mxu0 %v2979_v14 }
 0x6f8   :  { %3016 = vmatprep.subr.bf16.mxu0 %v3015_v28 }
 0x6fa   :  { %2558 = vmatmul.mubr.f32.vlgmr.msra.gmra.mrb[12].mxu0 %v3631_v21 }
 0x6fb   :  { %2560 = vmatprep.mubr.f32.mxu0 %v3637_v7  ;;  %3018 = vmatpush3.bf16.msra.mxu0 %v3015_v28 }
 0x6fc   :  { %3020 = vmatprep.subr.bf16.mxu0 %v3019_v32 }
 0x6fe   :  { %2561 = vmatmul.mubr.f32.gmra.mrb[14].mxu0 %v3639_v10 }
 0x6ff   :  { %3022 = vmatpush3.bf16.msra.mxu0 %v3019_v32  ;;  %2609 = vmatprep.mubr.msk.f32.mxu0 %vm248_vm0, %v1438_v33 }
 0x702   :  { %2610 = vmatmul.mubr.msk.f32.vlgmr.msra.gmra.mrb[12].mxu0 %vm248_vm0, %v1439_v31 }
 0x703   :  { %2612 = vmatprep.mubr.msk.f32.mxu0 %vm248_vm0, %v1440_v34 }
 0x706   :  { %2613 = vmatmul.mubr.msk.f32.gmra.mrb[14].mxu0 %vm248_vm0, %v1441_v35 }
 0x707   :  { %2623 = vmatprep.mubr.msk.f32.mxu0 %vm248_vm0, %v3539_v30 }
 0x7d5   :  { %v2611_v21 = vpop.f32.mrb[12].mxu0 }
 0x7d6   :  { %v1520_v7 = vpop.f32.mrb[13].mxu0 }
 0x7d7   :  { %v3023_v37 = vpack.c.bf16 %v2611_v21, %v1520_v7 }
 0x7d9   :  { %v2614_v39 = vpop.f32.mrb[14].mxu0  ;;  %3024 = vmatprep.subr.bf16.mxu0 %v3023_v37 }
 0x7da   :  { %v1530_v10 = vpop.f32.mrb[15].mxu0  ;;  %3026 = vmatpush3.bf16.msra.mxu0 %v3023_v37 }
 0x7db   :  { %v3027_v40 = vpack.c.bf16 %v2614_v39, %v1530_v10 }
 0x7dd   :  { %3028 = vmatprep.subr.bf16.mxu0 %v3027_v40 }
 0x7de   :  { %3030 = vmatpush3.bf16.msra.mxu0 %v3027_v40 }
 0x7e1   :  { %2624 = vmatmul.mubr.msk.f32.vlgmr.msra.gmra.mrb[16].mxu0 %vm248_vm0, %v3575_v63 }
 0x7e2   :  { %2626 = vmatprep.mubr.msk.f32.mxu0 %vm248_vm0, %v3577_v0 }
 0x7e5   :  { %2627 = vmatmul.mubr.msk.f32.gmra.mrb[18].mxu0 %vm248_vm0, %v3584_v1 }
 0x7e6   :  { %2675 = vmatprep.mubr.msk.f32.mxu0 %vm248_vm0, %v3539_v30 }
 0x8b4   :  { %v2625_v42 = vpop.f32.mrb[16].mxu0 }
 0x8b5   :  { %v1609_v43 = vpop.f32.mrb[17].mxu0 }
 0x8b6   :  { %2661 = vmatprep.mubr.f32.mxu1 %v1609_v43 }
 0x8b7   :  { %2662 = vmatmul.mubr.f32.vlgmr.msra.gmra.mrb[24].mxu1 %v2625_v42 }
 0x8b8   :  { %v2628_v45 = vpop.f32.mrb[18].mxu0 }
 0x8b9   :  { %v1619_v46 = vpop.f32.mrb[19].mxu0 }
 0x8ba   :  { %2664 = vmatprep.mubr.f32.mxu1 %v1619_v46 }
 0x8bb   :  { %2665 = vmatmul.mubr.f32.gmra.mrb[26].mxu1 %v2628_v45 }
 0x98a   :  { %v2663_v48 = vpop.f32.mrb[24].mxu1 }
 0x98b   :  { %v1714_v49 = vsub.f32 %v2611_v21, %v2663_v48  ;;  %v1694_v51 = vpop.f32.mrb[25].mxu1 }
 0x98c   :  { %v1713_v52 = vsub.f32 %v1520_v7, %v1694_v51 }
 0x98d   :  { %v1718_v54 = vmul.f32 %v1714_v49, %v1714_v49 }
 0x98e   :  { %v1717_v55 = vmul.f32 %v1713_v52, %v1713_v52  ;;  %v2666_v57 = vpop.f32.mrb[26].mxu1 }
 0x98f   :  { %v1716_v58 = vsub.f32 %v2614_v39, %v2666_v57  ;;  %v1704_v59 = vpop.f32.mrb[27].mxu1 }
 0x990   :  { %v1715_v60 = vsub.f32 %v1530_v10, %v1704_v59  ;;  %v3063_v61 = vpack.c.bf16 %v1718_v54, %v1717_v55 }
 0x991   :  { %v1720_v30 = vmul.f32 %v1716_v58, %v1716_v58 }
 0x992   :  { %v1719_v62 = vmul.f32 %v1715_v60, %v1715_v60  ;;  %3064 = vmatprep.subr.bf16.mxu0 %v3063_v61 }
 0x993   :  { %3066 = vmatpush3.bf16.msra.mxu0 %v3063_v61 }
 0x994   :  { %v3067_v2 = vpack.c.bf16 %v1720_v30, %v1719_v62 }
 0x996   :  { %3068 = vmatprep.subr.bf16.mxu0 %v3067_v2 }
 0x997   :  { %3070 = vmatpush3.bf16.msra.mxu0 %v3067_v2 }
 0x998   :  { %3072 = vmatprep.subr.bf16.mxu0 %v3543_v36 }
 0x99a   :  { %2676 = vmatmul.mubr.msk.f32.vlgmr.msra.gmra.mrb[20].mxu0 %vm248_vm0, %v3575_v63 }
 0x99b   :  { %2678 = vmatprep.mubr.msk.f32.mxu0 %vm248_vm0, %v3577_v0  ;;  %3074 = vmatpush3.bf16.msra.mxu0 %v3543_v36 }
 0x99c   :  { %3076 = vmatprep.subr.bf16.mxu0 %v3545_v38 }
 0x99e   :  { %2679 = vmatmul.mubr.msk.f32.gmra.mrb[22].mxu0 %vm248_vm0, %v3584_v1 }
 0x99f   :  { %3078 = vmatpush3.bf16.msra.mxu0 %v3545_v38 }
 0x9a0   :  { %3080 = vmatprep.subr.bf16.mxu0 %v3550_v41 }
 0x9a3   :  { %3082 = vmatpush3.bf16.msra.mxu0 %v3550_v41 }
 0x9a4   :  { %3084 = vmatprep.subr.bf16.mxu0 %v3554_v44 }
 0x9a7   :  { %3086 = vmatpush3.bf16.msra.mxu0 %v3554_v44 }
 0x9a8   :  { %3088 = vmatprep.subr.bf16.mxu0 %v3558_v47 }
 0x9ab   :  { %3090 = vmatpush3.bf16.msra.mxu0 %v3558_v47 }
 0x9ac   :  { %3092 = vmatprep.subr.bf16.mxu0 %v3562_v50 }
 0x9af   :  { %3094 = vmatpush3.bf16.msra.mxu0 %v3562_v50 }
 0x9b0   :  { %3096 = vmatprep.subr.bf16.mxu0 %v3566_v53 }
 0x9b3   :  { %3098 = vmatpush3.bf16.msra.mxu0 %v3566_v53 }
 0x9b4   :  { %3100 = vmatprep.subr.bf16.mxu0 %v3570_v56 }
 0x9b7   :  { %3102 = vmatpush3.bf16.msra.mxu0 %v3570_v56 }
 0xa6d   :  { %v2677_v36 = vpop.f32.mrb[20].mxu0 }
 0xa6e   :  { %v1787_v38 = vpop.f32.mrb[21].mxu0 }
 0xa6f   :  { %2713 = vmatprep.mubr.f32.mxu0 %v1787_v38 }
 0xa70   :  { %2714 = vmatmul.mubr.f32.vlgmr.msra.gmra.mrb[24].mxu0 %v2677_v36 }
 0xa71   :  { %v2680_v41 = vpop.f32.mrb[22].mxu0 }
 0xa72   :  { %v1797_v44 = vpop.f32.mrb[23].mxu0 }
 0xa73   :  { %2716 = vmatprep.mubr.f32.mxu0 %v1797_v44 }
 0xa74   :  { %2717 = vmatmul.mubr.f32.gmra.mrb[26].mxu0 %v2680_v41 }
 0xb43   :  { %v2715_v47 = vpop.f32.mrb[24].mxu0 }
 0xb44   :  { %v1878_v63 = vadd.f32 1e-05, %v2715_v47  ;;  %v1872_v0 = vpop.f32.mrb[25].mxu0 }
 0xb45   :  { %v1873_v50 = vadd.f32 1e-05, %v1872_v0 }
 0xb46   :  { %3137 = vrsqrt.f32 %v1878_v63 }
 0xb47   :  { %3139 = vrsqrt.f32 %v1873_v50  ;;  %v2718_v1 = vpop.f32.mrb[26].mxu0 }
 0xb48   :  { %v1888_v53 = vadd.f32 1e-05, %v2718_v1  ;;  %v1882_v3 = vpop.f32.mrb[27].mxu0 }
 0xb49   :  { %v1883_v4 = vadd.f32 1e-05, %v1882_v3 }
 0xb4a   :  { %3141 = vrsqrt.f32 %v1888_v53 }
 0xb4b   :  { %3143 = vrsqrt.f32 %v1883_v4 }
 0xb50   :  { %v3138_v56 = vpop.eup %3137 }
 0xb51   :  { %v3140_v5 = vpop.eup %3139  ;;  %v1896_v6 = vmul.f32 %v3138_v56, %v1714_v49 }
 0xb52   :  { %v1895_v8 = vmul.f32 %v3140_v5, %v1713_v52 }
 0xb53   :  { %v1900_v12 = vadd.f32 %v3145_v11, %v1896_v6 }
 0xb54   :  { %v3142_v13 = vpop.eup %3141  ;;  %v1899_v17 = vadd.f32 %v3146_v15, %v1895_v8 }
 0xb55   :  { %v3144_v18 = vpop.eup %3143  ;;  %v1898_v20 = vmul.f32 %v3142_v13, %v1716_v58  ;;  %v1904_v9 = vmax.f32 %v1900_v12, 0.0 }
 0xb56   :  { %v1897_v22 = vmul.f32 %v3144_v18, %v1715_v60  ;;  %v1903_v23 = vmax.f32 %v1899_v17, 0.0 }
 0xb57   :  { %v1902_v25 = vadd.f32 %v3147_v24, %v1898_v20  ;;  %1908 = vst [vmem:[#allocation14 + $0x8] sm:$0xff] %v1904_v9 }
 0xb58   :  { %v1901_v19 = vadd.f32 %v3148_v26, %v1897_v22  ;;  %1907 = vst [vmem:[#allocation14] sm:$0xff] %v1903_v23 }
 0xb59   :  { %v1906_v27 = vmax.f32 %v1902_v25, 0.0 }
 0xb5a   :  { %v1905_v28 = vmax.f32 %v1901_v19, 0.0 }
 0xb5b   :  { %1910 = vst [vmem:[#allocation14 + $0x18] sm:$0xff] %v1906_v27 }
 0xb5c   :  { %1909 = vst [vmem:[#allocation14 + $0x10] sm:$0xff] %v1905_v28 }
 0xb5d   :  { %3314 = shalt.err (!%p3311_p4)
}
 0xb5e   :  { %s3315_s27 = scalar_lea.hbm %s3729_s7, 512 }
 0xb5f   :  { %p3316_p5 = scmp.ne.s32.totalorder %s3729_s7, %s3315_s27  ;;  %p3319_p6 = scmp.lt.u32.totalorder %s3315_s27, %s3729_s7 }
 0xb61   :  { %p3321_p7 = pnand %p3319_p6, %p3316_p5 }
 0xb63   :  { %3324 = shalt.err (!%p3321_p7)
}
 0xb64   :  { %1922 = dma.vmem_to_hbm [thread:$0]  %s1917_s16, 512, %s3729_s7, [#allocation4], %s3337_s13, %s3337_s13, %s3338_s14  }
 0xb65   :  { %3333 = dma.done.wait [#allocation4], 512  }
 0xb66   :  { %3334 = vsyncadd [#allocation4], 4294966784 }
 0xb67   :  { %1926 = vsyncpa [#allocation3], 1 }
 0xb68   :  { %1927 = vsyncpa [#allocation6], 1 }
 0xb69   :  { %1928 = vsyncpa [#allocation9], 1 }
 0xb6a   :  { %1929 = vsyncpa [#allocation12], 1 }
 0xb6b   :  { %1930 = vsyncpa [#allocation4], 1 }

</bundles_post_ra>
